<compile_context>
chip_gen: v7x
topology: tpu7x:2x2x1
jax: 0.10.0
libtpu: 0.0.40
codegen_flags: <defaults>
</compile_context>

<pallas_src>
import jax
import jax.numpy as jnp
from jax.experimental import pallas as pl
from jax.experimental.pallas import tpu as pltpu

MXU_DTYPE = jnp.bfloat16   # MXU-native input dtype; accumulation is always f32
LANE = 128                 # lane-dense output width / K alignment
MAX_CONV_TILE_M = 1024     # safe (<= ~4 MiB double-buffered) on v5e/v6e/v7x
MAX_FC_TILE_B = 512


def _round_up(x, m):
    return ((x + m - 1) // m) * m


def _pick_tile(m, max_tile):
    """Pick a row-tile <= max_tile (multiple of 8) that avoids a padding-heavy
    tail tile: split m into ceil(m/max_tile) near-equal tiles."""
    m_aligned = _round_up(max(m, 1), 8)
    if m_aligned <= max_tile:
        return m_aligned
    n = -(-m // max_tile)             # ceil(m / max_tile)
    return _round_up(-(-m // n), 8)   # ceil(m / n), sublane-aligned


# ----------------------------- Pallas kernels ------------------------------

def _conv_pool_kernel(x_ref, w_ref, b_ref, o_ref):
    """Fused conv(im2col matmul) + 2x2 maxpool + bias + ReLU epilogue.

    x_ref: (4, TM, Kp) bf16   -- 4 = the pool window positions
    w_ref: (Kp, 128)  bf16
    b_ref: (1, 128)   f32
    o_ref: (TM, 128)  bf16
    """
    tm = x_ref.shape[1]
    kp = x_ref.shape[2]
    # One long LHS stream against the stationary weight (single MXU push/drain).
    x = x_ref[...].reshape(4 * tm, kp)                     # TM % 8 == 0: free reshape
    acc = jnp.dot(x, w_ref[...], preferred_element_type=jnp.float32)   # (4*TM, 128) f32
    # Maxpool over the 4 window positions (VPU), then ONE bias broadcast + ReLU.
    p01 = jnp.maximum(acc[0 * tm:1 * tm], acc[1 * tm:2 * tm])
    p23 = jnp.maximum(acc[2 * tm:3 * tm], acc[3 * tm:4 * tm])
    pooled = jnp.maximum(p01, p23)
    out = jnp.maximum(pooled + b_ref[...], 0.0)
    o_ref[...] = out.astype(o_ref.dtype)


def _fc_chain_kernel(x_ref, w1_ref, b1_ref, w2_ref, b2_ref, w3_ref, b3_ref, o_ref):
    """fc1(ReLU) -> fc2(ReLU) -> fc3 fused; intermediates never leave VMEM."""
    h1 = jnp.dot(x_ref[...], w1_ref[...], preferred_element_type=jnp.float32) + b1_ref[...]
    h1 = jnp.maximum(h1, 0.0)
    h2 = jnp.dot(h1.astype(w2_ref.dtype), w2_ref[...],
                 preferred_element_type=jnp.float32) + b2_ref[...]
    h2 = jnp.maximum(h2, 0.0)
    h3 = jnp.dot(h2.astype(w3_ref.dtype), w3_ref[...],
                 preferred_element_type=jnp.float32) + b3_ref[...]
    o_ref[...] = h3.astype(o_ref.dtype)


# ------------------------------ pallas_call wrappers ------------------------------

def _conv_pool_matmul(x4, wmat, bvec, tile_m):
    """x4: (4, Mp, Kp) bf16, wmat: (Kp, 128) bf16, bvec: (1, 128) f32 -> (Mp, 128) bf16."""
    _, Mp, Kp = x4.shape
    Np = wmat.shape[1]
    grid = (Mp // tile_m,)
    return pl.pallas_call(
        _conv_pool_kernel,
        out_shape=jax.ShapeDtypeStruct((Mp, Np), MXU_DTYPE),
        grid_spec=pltpu.PrefetchScalarGridSpec(
            num_scalar_prefetch=0,
            grid=grid,
            in_specs=[
                pl.BlockSpec((4, tile_m, Kp), lambda i: (0, i, 0)),  # row tiles, pipelined
                pl.BlockSpec((Kp, Np), lambda i: (0, 0)),            # weights resident
                pl.BlockSpec((1, Np), lambda i: (0, 0)),             # bias resident
            ],
            out_specs=pl.BlockSpec((tile_m, Np), lambda i: (i, 0)),
        ),
        compiler_params=pltpu.CompilerParams(dimension_semantics=("parallel",)),
    )(x4, wmat, bvec)


def _fc_chain_call(xin, w1, b1, w2, b2, w3, b3, tile_b):
    Bp, Kp = xin.shape
    grid = (Bp // tile_b,)
    return pl.pallas_call(
        _fc_chain_kernel,
        out_shape=jax.ShapeDtypeStruct((Bp, LANE), jnp.float32),
        grid_spec=pltpu.PrefetchScalarGridSpec(
            num_scalar_prefetch=0,
            grid=grid,
            in_specs=[
                pl.BlockSpec((tile_b, Kp), lambda i: (i, 0)),    # batch tiles, pipelined
                pl.BlockSpec((Kp, LANE), lambda i: (0, 0)),      # fc1 w resident
                pl.BlockSpec((1, LANE), lambda i: (0, 0)),
                pl.BlockSpec((LANE, LANE), lambda i: (0, 0)),    # fc2 w resident
                pl.BlockSpec((1, LANE), lambda i: (0, 0)),
                pl.BlockSpec((LANE, LANE), lambda i: (0, 0)),    # fc3 w resident
                pl.BlockSpec((1, LANE), lambda i: (0, 0)),
            ],
            out_specs=pl.BlockSpec((tile_b, LANE), lambda i: (i, 0)),
        ),
        compiler_params=pltpu.CompilerParams(dimension_semantics=("parallel",)),
    )(xin, w1, b1, w2, b2, w3, b3)


# ------------------------------ layer wrappers ------------------------------

def _conv_pool_patches(x, KH, KW):
    """NHWC x: (B,H,W,C) -> (4, B*Hp*Wp, KH*KW*C), grouped by 2x2 pool window position.

    Feature order within a patch is (KH, KW, C).  Built with strided slices only
    (no full-activation transposes); runs on the input's (bf16) dtype.
    """
    B, H, W, C = x.shape
    Hp, Wp = (H - KH + 1) // 2, (W - KW + 1) // 2
    groups = []
    for pr in range(2):
        for pc in range(2):
            cols = jnp.stack(
                [x[:, pr + i: pr + i + 2 * Hp: 2, pc + j: pc + j + 2 * Wp: 2, :]
                 for i in range(KH) for j in range(KW)],
                axis=3,
            )  # (B, Hp, Wp, KH*KW, C)
            groups.append(cols.reshape(B * Hp * Wp, KH * KW * C))
    return jnp.stack(groups, axis=0), (Hp, Wp)


def conv_relu_pool(x, w, b):
    """x: (B,H,W,C) NHWC bf16, w: (O,C,KH,KW) torch layout f32, b: (O,) f32.

    Returns pool(relu(conv(x))) in NHWC bf16: (B, Hp, Wp, O).
    Note: even conv-output spatial sizes are assumed (matches torch MaxPool2d
    defaults for this net's 32x32 input; odd sizes would drop the last row/col).
    """
    B = x.shape[0]
    O, C, KH, KW = w.shape
    K = KH * KW * C
    Kp = _round_up(K, LANE)
    Np = LANE

    x4, (Hp, Wp) = _conv_pool_patches(x, KH, KW)          # (4, M, K) bf16
    M = x4.shape[1]
    tile_m = _pick_tile(M, MAX_CONV_TILE_M)
    Mp = _round_up(M, tile_m)
    x4 = jnp.pad(x4, ((0, 0), (0, Mp - M), (0, Kp - K)))  # stays bf16

    # weight to (KH,KW,C,O) so rows match the (KH,KW,C) patch feature order
    wmat = jnp.transpose(w, (2, 3, 1, 0)).reshape(K, O)
    wmat = jnp.pad(wmat, ((0, Kp - K), (0, Np - O))).astype(MXU_DTYPE)
    bvec = jnp.pad(b, (0, Np - O)).reshape(1, Np).astype(jnp.float32)

    out = _conv_pool_matmul(x4, wmat, bvec, tile_m)       # (Mp, 128) bf16
    return out[:M, :O].reshape(B, Hp, Wp, O)


def fc_chain(x, params):
    """x: (B, 400) bf16 features in (H,W,C) order -> (B, 10) f32."""
    B, K = x.shape
    tile_b = _pick_tile(B, MAX_FC_TILE_B)
    Bp = _round_up(B, tile_b)
    Kp = _round_up(K, LANE)                                # 400 -> 512
    xin = jnp.pad(x, ((0, Bp - B), (0, Kp - K))).astype(MXU_DTYPE)

    # fc1 weight: torch flatten order is (C,H,W); reorder to (H,W,C) to match NHWC flatten.
    w1 = params["fc1_w"].reshape(120, 16, 5, 5).transpose(0, 2, 3, 1).reshape(120, 400).T
    w1 = jnp.pad(w1, ((0, Kp - 400), (0, LANE - 120))).astype(MXU_DTYPE)
    b1 = jnp.pad(params["fc1_b"], (0, LANE - 120)).reshape(1, LANE).astype(jnp.float32)

    w2 = jnp.pad(params["fc2_w"].T, ((0, LANE - 120), (0, LANE - 84))).astype(MXU_DTYPE)
    b2 = jnp.pad(params["fc2_b"], (0, LANE - 84)).reshape(1, LANE).astype(jnp.float32)

    w3 = jnp.pad(params["fc3_w"].T, ((0, LANE - 84), (0, LANE - 10))).astype(MXU_DTYPE)
    b3 = jnp.pad(params["fc3_b"], (0, LANE - 10)).reshape(1, LANE).astype(jnp.float32)

    out = _fc_chain_call(xin, w1, b1, w2, b2, w3, b3, tile_b)   # (Bp, 128) f32
    return out[:B, :10]


# ------------------------------ the full model ------------------------------

def net_forward(params, x):
    # x: (B, 3, 32, 32) NCHW float32 (torch convention).
    # Single layout change + single cast: channels-last bf16 for the whole
    # im2col / conv path (halves the dominant HBM traffic outside the kernels).
    B = x.shape[0]
    x = jnp.transpose(x, (0, 2, 3, 1)).astype(MXU_DTYPE)                # (B,32,32,3) bf16
    x = conv_relu_pool(x, params["conv1_w"], params["conv1_b"])         # (B,14,14,6) bf16
    x = conv_relu_pool(x, params["conv2_w"], params["conv2_b"])         # (B,5,5,16)  bf16
    feat = x.reshape(B, 5 * 5 * 16)                                     # (H,W,C) flatten, bf16
    return fc_chain(feat, params)                                       # (B,10) f32


def init_params(key):
    ks = jax.random.split(key, 10)
    s = 0.05
    return {
        "conv1_w": s * jax.random.normal(ks[0], (6, 3, 5, 5), jnp.float32),
        "conv1_b": s * jax.random.normal(ks[1], (6,), jnp.float32),
        "conv2_w": s * jax.random.normal(ks[2], (16, 6, 5, 5), jnp.float32),
        "conv2_b": s * jax.random.normal(ks[3], (16,), jnp.float32),
        "fc1_w":  s * jax.random.normal(ks[4], (120, 16 * 5 * 5), jnp.float32),
        "fc1_b":  s * jax.random.normal(ks[5], (120,), jnp.float32),
        "fc2_w":  s * jax.random.normal(ks[6], (84, 120), jnp.float32),
        "fc2_b":  s * jax.random.normal(ks[7], (84,), jnp.float32),
        "fc3_w":  s * jax.random.normal(ks[8], (10, 84), jnp.float32),
        "fc3_b":  s * jax.random.normal(ks[9], (10,), jnp.float32),
    }


if __name__ == "__main__":
    key = jax.random.PRNGKey(0)
    pkey, xkey = jax.random.split(key)
    params = init_params(pkey)
    # The module's forward implies 32x32 spatial input (CIFAR-like): 16*5*5 flatten.
    x = jax.random.normal(xkey, (2, 3, 32, 32), jnp.float32)

    fwd = jax.jit(net_forward)
    out = fwd(params, x)
    out = jax.block_until_ready(out)
    assert out.shape == (2, 10) and out.dtype == jnp.float32
    print("KERNEL_OK")
</pallas_src>

<mosaic_0001>
module attributes {stable_mosaic.version = 11 : i64} {
  func.func @_conv_pool_kernel(%arg0: i32, %arg1: memref<4x392x128xbf16, #tpu.memory_space<vmem>>, %arg2: memref<128x128xbf16, #tpu.memory_space<vmem>>, %arg3: memref<1x128xf32, #tpu.memory_space<vmem>>, %arg4: memref<392x128xbf16, #tpu.memory_space<vmem>>) attributes {dimension_semantics = [#tpu.dimension_semantics<parallel>], iteration_bounds = array<i64: 1>, scalar_prefetch = 0 : i64, scratch_operands = 0 : i64, tpu.core_type = #tpu.core_type<tc>, window_params = [{transform_indices = @transform_0, window_bounds = array<i64: 4, 392, 128>}, {pipeline_mode = #tpu.pipeline_mode<synchronous>, transform_indices = @transform_1, window_bounds = array<i64: 128, 128>}, {pipeline_mode = #tpu.pipeline_mode<synchronous>, transform_indices = @transform_2, window_bounds = array<i64: 1, 128>}, {transform_indices = @transform_3, window_bounds = array<i64: 392, 128>}]} {
    %c0 = arith.constant 0 : index
    %c0_0 = arith.constant 0 : index
    %c0_1 = arith.constant 0 : index
    %0 = vector.load %arg1[%c0, %c0_0, %c0_1] : memref<4x392x128xbf16, #tpu.memory_space<vmem>>, vector<4x392x128xbf16>
    %1 = vector.shape_cast %0 : vector<4x392x128xbf16> to vector<1568x128xbf16>
    %c0_2 = arith.constant 0 : index
    %c0_3 = arith.constant 0 : index
    %2 = vector.load %arg2[%c0_2, %c0_3] : memref<128x128xbf16, #tpu.memory_space<vmem>>, vector<128x128xbf16>
    %cst = arith.constant dense<0.000000e+00> : vector<1568x128xf32>
    %3 = tpu.matmul %1, %2, %cst {dimension_numbers = #tpu.dot_dimension_numbers<[1], [0], [0], [1], [0, 0, 1, 1], [], []>} : vector<1568x128xbf16>, vector<128x128xbf16>, vector<1568x128xf32> -> vector<1568x128xf32>
    %4 = vector.extract_strided_slice %3 {offsets = [0, 0], sizes = [392, 128], strides = [1, 1]} : vector<1568x128xf32> to vector<392x128xf32>
    %5 = vector.extract_strided_slice %3 {offsets = [392, 0], sizes = [392, 128], strides = [1, 1]} : vector<1568x128xf32> to vector<392x128xf32>
    %6 = arith.maximumf %4, %5 : vector<392x128xf32>
    %7 = vector.extract_strided_slice %3 {offsets = [784, 0], sizes = [392, 128], strides = [1, 1]} : vector<1568x128xf32> to vector<392x128xf32>
    %8 = vector.extract_strided_slice %3 {offsets = [1176, 0], sizes = [392, 128], strides = [1, 1]} : vector<1568x128xf32> to vector<392x128xf32>
    %9 = arith.maximumf %7, %8 : vector<392x128xf32>
    %10 = arith.maximumf %6, %9 : vector<392x128xf32>
    %c0_4 = arith.constant 0 : index
    %c0_5 = arith.constant 0 : index
    %11 = vector.load %arg3[%c0_4, %c0_5] : memref<1x128xf32, #tpu.memory_space<vmem>>, vector<1x128xf32>
    %12 = vector.broadcast %11 : vector<1x128xf32> to vector<392x128xf32>
    %13 = arith.addf %10, %12 : vector<392x128xf32>
    %cst_6 = arith.constant 0.000000e+00 : f32
    %14 = vector.broadcast %cst_6 : f32 to vector<392x128xf32>
    %15 = arith.maximumf %13, %14 : vector<392x128xf32>
    %16 = arith.truncf %15 : vector<392x128xf32> to vector<392x128xbf16>
    %c0_7 = arith.constant 0 : index
    %c0_8 = arith.constant 0 : index
    %17 = vector.load %arg4[%c0_7, %c0_8] : memref<392x128xbf16, #tpu.memory_space<vmem>>, vector<392x128xbf16>
    tpu.vector_store %arg4[%c0_7, %c0_8], %16 {strides = array<i32>} : memref<392x128xbf16, #tpu.memory_space<vmem>>, vector<392x128xbf16>,
    return
  }
  func.func @transform_0(%arg0: i32) -> (i32, i32, i32) {
    %c0_i32 = arith.constant 0 : i32
    %c0_i32_0 = arith.constant 0 : i32
    %c0_i32_1 = arith.constant 0 : i32
    return %c0_i32, %arg0, %c0_i32_0 : i32, i32, i32
  }
  func.func @transform_1(%arg0: i32) -> (i32, i32) {
    %c0_i32 = arith.constant 0 : i32
    %c0_i32_0 = arith.constant 0 : i32
    %c0_i32_1 = arith.constant 0 : i32
    return %c0_i32, %c0_i32_0 : i32, i32
  }
  func.func @transform_2(%arg0: i32) -> (i32, i32) {
    %c0_i32 = arith.constant 0 : i32
    %c0_i32_0 = arith.constant 0 : i32
    %c0_i32_1 = arith.constant 0 : i32
    return %c0_i32, %c0_i32_0 : i32, i32
  }
  func.func @transform_3(%arg0: i32) -> (i32, i32) {
    %c0_i32 = arith.constant 0 : i32
    %c0_i32_0 = arith.constant 0 : i32
    return %arg0, %c0_i32 : i32, i32
  }
}

module attributes {stable_mosaic.version = 11 : i64} {
  func.func @_conv_pool_kernel(%arg0: i32, %arg1: memref<4x56x256xbf16, #tpu.memory_space<vmem>>, %arg2: memref<256x128xbf16, #tpu.memory_space<vmem>>, %arg3: memref<1x128xf32, #tpu.memory_space<vmem>>, %arg4: memref<56x128xbf16, #tpu.memory_space<vmem>>) attributes {dimension_semantics = [#tpu.dimension_semantics<parallel>], iteration_bounds = array<i64: 1>, scalar_prefetch = 0 : i64, scratch_operands = 0 : i64, tpu.core_type = #tpu.core_type<tc>, window_params = [{transform_indices = @transform_0, window_bounds = array<i64: 4, 56, 256>}, {pipeline_mode = #tpu.pipeline_mode<synchronous>, transform_indices = @transform_1, window_bounds = array<i64: 256, 128>}, {pipeline_mode = #tpu.pipeline_mode<synchronous>, transform_indices = @transform_2, window_bounds = array<i64: 1, 128>}, {transform_indices = @transform_3, window_bounds = array<i64: 56, 128>}]} {
    %c0 = arith.constant 0 : index
    %c0_0 = arith.constant 0 : index
    %c0_1 = arith.constant 0 : index
    %0 = vector.load %arg1[%c0, %c0_0, %c0_1] : memref<4x56x256xbf16, #tpu.memory_space<vmem>>, vector<4x56x256xbf16>
    %1 = vector.shape_cast %0 : vector<4x56x256xbf16> to vector<224x256xbf16>
    %c0_2 = arith.constant 0 : index
    %c0_3 = arith.constant 0 : index
    %2 = vector.load %arg2[%c0_2, %c0_3] : memref<256x128xbf16, #tpu.memory_space<vmem>>, vector<256x128xbf16>
    %cst = arith.constant dense<0.000000e+00> : vector<224x128xf32>
    %3 = tpu.matmul %1, %2, %cst {dimension_numbers = #tpu.dot_dimension_numbers<[1], [0], [0], [1], [0, 0, 1, 1], [], []>} : vector<224x256xbf16>, vector<256x128xbf16>, vector<224x128xf32> -> vector<224x128xf32>
    %4 = vector.extract_strided_slice %3 {offsets = [0, 0], sizes = [56, 128], strides = [1, 1]} : vector<224x128xf32> to vector<56x128xf32>
    %5 = vector.extract_strided_slice %3 {offsets = [56, 0], sizes = [56, 128], strides = [1, 1]} : vector<224x128xf32> to vector<56x128xf32>
    %6 = arith.maximumf %4, %5 : vector<56x128xf32>
    %7 = vector.extract_strided_slice %3 {offsets = [112, 0], sizes = [56, 128], strides = [1, 1]} : vector<224x128xf32> to vector<56x128xf32>
    %8 = vector.extract_strided_slice %3 {offsets = [168, 0], sizes = [56, 128], strides = [1, 1]} : vector<224x128xf32> to vector<56x128xf32>
    %9 = arith.maximumf %7, %8 : vector<56x128xf32>
    %10 = arith.maximumf %6, %9 : vector<56x128xf32>
    %c0_4 = arith.constant 0 : index
    %c0_5 = arith.constant 0 : index
    %11 = vector.load %arg3[%c0_4, %c0_5] : memref<1x128xf32, #tpu.memory_space<vmem>>, vector<1x128xf32>
    %12 = vector.broadcast %11 : vector<1x128xf32> to vector<56x128xf32>
    %13 = arith.addf %10, %12 : vector<56x128xf32>
    %cst_6 = arith.constant 0.000000e+00 : f32
    %14 = vector.broadcast %cst_6 : f32 to vector<56x128xf32>
    %15 = arith.maximumf %13, %14 : vector<56x128xf32>
    %16 = arith.truncf %15 : vector<56x128xf32> to vector<56x128xbf16>
    %c0_7 = arith.constant 0 : index
    %c0_8 = arith.constant 0 : index
    %17 = vector.load %arg4[%c0_7, %c0_8] : memref<56x128xbf16, #tpu.memory_space<vmem>>, vector<56x128xbf16>
    tpu.vector_store %arg4[%c0_7, %c0_8], %16 {strides = array<i32>} : memref<56x128xbf16, #tpu.memory_space<vmem>>, vector<56x128xbf16>,
    return
  }
  func.func @transform_0(%arg0: i32) -> (i32, i32, i32) {
    %c0_i32 = arith.constant 0 : i32
    %c0_i32_0 = arith.constant 0 : i32
    %c0_i32_1 = arith.constant 0 : i32
    return %c0_i32, %arg0, %c0_i32_0 : i32, i32, i32
  }
  func.func @transform_1(%arg0: i32) -> (i32, i32) {
    %c0_i32 = arith.constant 0 : i32
    %c0_i32_0 = arith.constant 0 : i32
    %c0_i32_1 = arith.constant 0 : i32
    return %c0_i32, %c0_i32_0 : i32, i32
  }
  func.func @transform_2(%arg0: i32) -> (i32, i32) {
    %c0_i32 = arith.constant 0 : i32
    %c0_i32_0 = arith.constant 0 : i32
    %c0_i32_1 = arith.constant 0 : i32
    return %c0_i32, %c0_i32_0 : i32, i32
  }
  func.func @transform_3(%arg0: i32) -> (i32, i32) {
    %c0_i32 = arith.constant 0 : i32
    %c0_i32_0 = arith.constant 0 : i32
    return %arg0, %c0_i32 : i32, i32
  }
}

module attributes {stable_mosaic.version = 11 : i64} {
  func.func @_fc_chain_kernel(%arg0: i32, %arg1: memref<8x512xbf16, #tpu.memory_space<vmem>>, %arg2: memref<512x128xbf16, #tpu.memory_space<vmem>>, %arg3: memref<1x128xf32, #tpu.memory_space<vmem>>, %arg4: memref<128x128xbf16, #tpu.memory_space<vmem>>, %arg5: memref<1x128xf32, #tpu.memory_space<vmem>>, %arg6: memref<128x128xbf16, #tpu.memory_space<vmem>>, %arg7: memref<1x128xf32, #tpu.memory_space<vmem>>, %arg8: memref<8x128xf32, #tpu.memory_space<vmem>>) attributes {dimension_semantics = [#tpu.dimension_semantics<parallel>], iteration_bounds = array<i64: 1>, scalar_prefetch = 0 : i64, scratch_operands = 0 : i64, tpu.core_type = #tpu.core_type<tc>, window_params = [{transform_indices = @transform_0, window_bounds = array<i64: 8, 512>}, {pipeline_mode = #tpu.pipeline_mode<synchronous>, transform_indices = @transform_1, window_bounds = array<i64: 512, 128>}, {pipeline_mode = #tpu.pipeline_mode<synchronous>, transform_indices = @transform_2, window_bounds = array<i64: 1, 128>}, {pipeline_mode = #tpu.pipeline_mode<synchronous>, transform_indices = @transform_3, window_bounds = array<i64: 128, 128>}, {pipeline_mode = #tpu.pipeline_mode<synchronous>, transform_indices = @transform_4, window_bounds = array<i64: 1, 128>}, {pipeline_mode = #tpu.pipeline_mode<synchronous>, transform_indices = @transform_5, window_bounds = array<i64: 128, 128>}, {pipeline_mode = #tpu.pipeline_mode<synchronous>, transform_indices = @transform_6, window_bounds = array<i64: 1, 128>}, {transform_indices = @transform_7, window_bounds = array<i64: 8, 128>}]} {
    %c0 = arith.constant 0 : index
    %c0_0 = arith.constant 0 : index
    %0 = vector.load %arg1[%c0, %c0_0] : memref<8x512xbf16, #tpu.memory_space<vmem>>, vector<8x512xbf16>
    %c0_1 = arith.constant 0 : index
    %c0_2 = arith.constant 0 : index
    %1 = vector.load %arg2[%c0_1, %c0_2] : memref<512x128xbf16, #tpu.memory_space<vmem>>, vector<512x128xbf16>
    %cst = arith.constant dense<0.000000e+00> : vector<8x128xf32>
    %2 = tpu.matmul %0, %1, %cst {dimension_numbers = #tpu.dot_dimension_numbers<[1], [0], [0], [1], [0, 0, 1, 1], [], []>} : vector<8x512xbf16>, vector<512x128xbf16>, vector<8x128xf32> -> vector<8x128xf32>
    %c0_3 = arith.constant 0 : index
    %c0_4 = arith.constant 0 : index
    %3 = vector.load %arg3[%c0_3, %c0_4] : memref<1x128xf32, #tpu.memory_space<vmem>>, vector<1x128xf32>
    %4 = vector.broadcast %3 : vector<1x128xf32> to vector<8x128xf32>
    %5 = arith.addf %2, %4 : vector<8x128xf32>
    %cst_5 = arith.constant 0.000000e+00 : f32
    %6 = vector.broadcast %cst_5 : f32 to vector<8x128xf32>
    %7 = arith.maximumf %5, %6 : vector<8x128xf32>
    %8 = arith.truncf %7 : vector<8x128xf32> to vector<8x128xbf16>
    %c0_6 = arith.constant 0 : index
    %c0_7 = arith.constant 0 : index
    %9 = vector.load %arg4[%c0_6, %c0_7] : memref<128x128xbf16, #tpu.memory_space<vmem>>, vector<128x128xbf16>
    %cst_8 = arith.constant dense<0.000000e+00> : vector<8x128xf32>
    %10 = tpu.matmul %8, %9, %cst_8 {dimension_numbers = #tpu.dot_dimension_numbers<[1], [0], [0], [1], [0, 0, 1, 1], [], []>} : vector<8x128xbf16>, vector<128x128xbf16>, vector<8x128xf32> -> vector<8x128xf32>
    %c0_9 = arith.constant 0 : index
    %c0_10 = arith.constant 0 : index
    %11 = vector.load %arg5[%c0_9, %c0_10] : memref<1x128xf32, #tpu.memory_space<vmem>>, vector<1x128xf32>
    %12 = vector.broadcast %11 : vector<1x128xf32> to vector<8x128xf32>
    %13 = arith.addf %10, %12 : vector<8x128xf32>
    %cst_11 = arith.constant 0.000000e+00 : f32
    %14 = vector.broadcast %cst_11 : f32 to vector<8x128xf32>
    %15 = arith.maximumf %13, %14 : vector<8x128xf32>
    %16 = arith.truncf %15 : vector<8x128xf32> to vector<8x128xbf16>
    %c0_12 = arith.constant 0 : index
    %c0_13 = arith.constant 0 : index
    %17 = vector.load %arg6[%c0_12, %c0_13] : memref<128x128xbf16, #tpu.memory_space<vmem>>, vector<128x128xbf16>
    %cst_14 = arith.constant dense<0.000000e+00> : vector<8x128xf32>
    %18 = tpu.matmul %16, %17, %cst_14 {dimension_numbers = #tpu.dot_dimension_numbers<[1], [0], [0], [1], [0, 0, 1, 1], [], []>} : vector<8x128xbf16>, vector<128x128xbf16>, vector<8x128xf32> -> vector<8x128xf32>
    %c0_15 = arith.constant 0 : index
    %c0_16 = arith.constant 0 : index
    %19 = vector.load %arg7[%c0_15, %c0_16] : memref<1x128xf32, #tpu.memory_space<vmem>>, vector<1x128xf32>
    %20 = vector.broadcast %19 : vector<1x128xf32> to vector<8x128xf32>
    %21 = arith.addf %18, %20 : vector<8x128xf32>
    %c0_17 = arith.constant 0 : index
    %c0_18 = arith.constant 0 : index
    %22 = vector.load %arg8[%c0_17, %c0_18] : memref<8x128xf32, #tpu.memory_space<vmem>>, vector<8x128xf32>
    tpu.vector_store %arg8[%c0_17, %c0_18], %21 {strides = array<i32>} : memref<8x128xf32, #tpu.memory_space<vmem>>, vector<8x128xf32>,
    return
  }
  func.func @transform_0(%arg0: i32) -> (i32, i32) {
    %c0_i32 = arith.constant 0 : i32
    %c0_i32_0 = arith.constant 0 : i32
    return %arg0, %c0_i32 : i32, i32
  }
  func.func @transform_1(%arg0: i32) -> (i32, i32) {
    %c0_i32 = arith.constant 0 : i32
    %c0_i32_0 = arith.constant 0 : i32
    %c0_i32_1 = arith.constant 0 : i32
    return %c0_i32, %c0_i32_0 : i32, i32
  }
  func.func @transform_2(%arg0: i32) -> (i32, i32) {
    %c0_i32 = arith.constant 0 : i32
    %c0_i32_0 = arith.constant 0 : i32
    %c0_i32_1 = arith.constant 0 : i32
    return %c0_i32, %c0_i32_0 : i32, i32
  }
  func.func @transform_3(%arg0: i32) -> (i32, i32) {
    %c0_i32 = arith.constant 0 : i32
    %c0_i32_0 = arith.constant 0 : i32
    %c0_i32_1 = arith.constant 0 : i32
    return %c0_i32, %c0_i32_0 : i32, i32
  }
  func.func @transform_4(%arg0: i32) -> (i32, i32) {
    %c0_i32 = arith.constant 0 : i32
    %c0_i32_0 = arith.constant 0 : i32
    %c0_i32_1 = arith.constant 0 : i32
    return %c0_i32, %c0_i32_0 : i32, i32
  }
  func.func @transform_5(%arg0: i32) -> (i32, i32) {
    %c0_i32 = arith.constant 0 : i32
    %c0_i32_0 = arith.constant 0 : i32
    %c0_i32_1 = arith.constant 0 : i32
    return %c0_i32, %c0_i32_0 : i32, i32
  }
  func.func @transform_6(%arg0: i32) -> (i32, i32) {
    %c0_i32 = arith.constant 0 : i32
    %c0_i32_0 = arith.constant 0 : i32
    %c0_i32_1 = arith.constant 0 : i32
    return %c0_i32, %c0_i32_0 : i32, i32
  }
  func.func @transform_7(%arg0: i32) -> (i32, i32) {
    %c0_i32 = arith.constant 0 : i32
    %c0_i32_0 = arith.constant 0 : i32
    return %arg0, %c0_i32 : i32, i32
  }
}

</mosaic_0001>

<bundles_post_ra>
// kernel: net_forward.3
= control target key start
LH: loop header
LB: loop body
LE: loop exit
PB: predicated region body
PF: predicated region fallthrough
CT: control target
= control target key end

     0   :  { %s3743_s1 = inlined_call_operand.vmem [shape: bf16[128,128], index: 1, kind: input, shape index: {}]   ;;  %s3744_s0 = inlined_call_operand.vmem [shape: bf16[4,392,128], index: 0, kind: input, shape index: {}]   ;;  %s3745_s2 = inlined_call_operand.vmem [shape: f32[1,128], index: 2, kind: input, shape index: {}]   ;;  %s3746_s3 = inlined_call_operand.vmem [shape: bf16[392,128], index: 3, kind: output, shape index: {}]  }
   0x1   :  { %v2864_v0 = vld [vmem:[%s3743_s1] sm:$0xff]   ;;  %v2865_v1 = vld [vmem:[%s3743_s1 + $0x8] sm:$0xff]   ;;  %v2866_v2 = vld [vmem:[%s3743_s1 + $0x10] sm:$0xff]  }
   0x2   :  { %2636 = vmatprep.subr.bf16.mxu0 %v2864_v0  ;;  %2848 = vmatprep.subr.bf16.mxu1 %v2864_v0  ;;  %v2867_v3 = vld [vmem:[%s3743_s1 + $0x18] sm:$0xff]   ;;  %v2872_v4 = vld [vmem:[%s3744_s0] sm:$0xff]   ;;  %v2873_v5 = vld [vmem:[%s3744_s0 + $0x190] sm:$0xff]  }
   0x3   :  { %2637 = vmatpush3.bf16.msra.mxu0 %v2864_v0  ;;  %2856 = vmatpush3.bf16.msra.mxu1 %v2864_v0  ;;  %v2868_v6 = vld [vmem:[%s3743_s1 + $0x20] sm:$0xff]   ;;  %v2869_v7 = vld [vmem:[%s3743_s1 + $0x28] sm:$0xff]   ;;  %v2870_v8 = vld [vmem:[%s3743_s1 + $0x30] sm:$0xff]  }
   0x4   :  { %2638 = vmatprep.subr.bf16.mxu0 %v2865_v1  ;;  %2849 = vmatprep.subr.bf16.mxu1 %v2865_v1  ;;  %v2871_v9 = vld [vmem:[%s3743_s1 + $0x38] sm:$0xff]   ;;  %v2874_v10 = vld [vmem:[%s3744_s0 + $0x8] sm:$0xff]   ;;  %v2876_v12 = vld [vmem:[%s3744_s0 + $0x10] sm:$0xff]  }
   0x5   :  { %2652 = vmatprep.mubr.bf16.mxu0 %v2872_v4  ;;  %2752 = vmatprep.mubr.bf16.mxu1 %v2873_v5  ;;  %v2875_v11 = vld [vmem:[%s3744_s0 + $0x198] sm:$0xff]   ;;  %v2877_v13 = vld [vmem:[%s3744_s0 + $0x1a0] sm:$0xff]   ;;  %v2879_v15 = vld [vmem:[%s3744_s0 + $0x1a8] sm:$0xff]  }
   0x6   :  { %v2878_v14 = vld [vmem:[%s3744_s0 + $0x18] sm:$0xff]   ;;  %v2880_v16 = vld [vmem:[%s3744_s0 + $0x20] sm:$0xff]   ;;  %v2881_v17 = vld [vmem:[%s3744_s0 + $0x1b0] sm:$0xff]  }
   0x7   :  { %2639 = vmatpush3.bf16.msra.mxu0 %v2865_v1  ;;  %2857 = vmatpush3.bf16.msra.mxu1 %v2865_v1  ;;  %v2882_v18 = vld [vmem:[%s3744_s0 + $0x28] sm:$0xff]   ;;  %v2883_v19 = vld [vmem:[%s3744_s0 + $0x1b8] sm:$0xff]   ;;  %v2884_v20 = vld [vmem:[%s3744_s0 + $0x30] sm:$0xff]  }
   0x8   :  { %2640 = vmatprep.subr.bf16.mxu0 %v2866_v2  ;;  %2850 = vmatprep.subr.bf16.mxu1 %v2866_v2  ;;  %v2885_v21 = vld [vmem:[%s3744_s0 + $0x1c0] sm:$0xff]   ;;  %v2886_v22 = vld [vmem:[%s3744_s0 + $0x38] sm:$0xff]   ;;  %v2887_v23 = vld [vmem:[%s3744_s0 + $0x1c8] sm:$0xff]  }
   0x9   :  { %v2888_v24 = vld [vmem:[%s3744_s0 + $0x40] sm:$0xff]   ;;  %v2889_v25 = vld [vmem:[%s3744_s0 + $0x1d0] sm:$0xff]   ;;  %v2890_v26 = vld [vmem:[%s3744_s0 + $0x48] sm:$0xff]  }
   0xa   :  { %v2891_v27 = vld [vmem:[%s3744_s0 + $0x1d8] sm:$0xff]   ;;  %v2892_v28 = vld [vmem:[%s3744_s0 + $0x50] sm:$0xff]   ;;  %v2893_v29 = vld [vmem:[%s3744_s0 + $0x1e0] sm:$0xff]  }
   0xb   :  { %2641 = vmatpush3.bf16.msra.mxu0 %v2866_v2  ;;  %2858 = vmatpush3.bf16.msra.mxu1 %v2866_v2  ;;  %v2894_v30 = vld [vmem:[%s3744_s0 + $0x58] sm:$0xff]   ;;  %v2895_v31 = vld [vmem:[%s3744_s0 + $0x1e8] sm:$0xff]   ;;  %v2896_v32 = vld [vmem:[%s3744_s0 + $0x60] sm:$0xff]  }
   0xc   :  { %2642 = vmatprep.subr.bf16.mxu0 %v2867_v3  ;;  %2851 = vmatprep.subr.bf16.mxu1 %v2867_v3  ;;  %v2897_v33 = vld [vmem:[%s3744_s0 + $0x1f0] sm:$0xff]   ;;  %v2898_v34 = vld [vmem:[%s3744_s0 + $0x68] sm:$0xff]   ;;  %v2899_v35 = vld [vmem:[%s3744_s0 + $0x1f8] sm:$0xff]  }
   0xd   :  { %v2900_v36 = vld [vmem:[%s3744_s0 + $0x70] sm:$0xff]   ;;  %v2901_v37 = vld [vmem:[%s3744_s0 + $0x200] sm:$0xff]   ;;  %v2902_v38 = vld [vmem:[%s3744_s0 + $0x78] sm:$0xff]  }
   0xe   :  { %v2903_v39 = vld [vmem:[%s3744_s0 + $0x208] sm:$0xff]   ;;  %v2904_v40 = vld [vmem:[%s3744_s0 + $0x80] sm:$0xff]   ;;  %v2905_v41 = vld [vmem:[%s3744_s0 + $0x210] sm:$0xff]  }
   0xf   :  { %2643 = vmatpush3.bf16.msra.mxu0 %v2867_v3  ;;  %2859 = vmatpush3.bf16.msra.mxu1 %v2867_v3  ;;  %v2906_v42 = vld [vmem:[%s3744_s0 + $0x88] sm:$0xff]   ;;  %v2907_v43 = vld [vmem:[%s3744_s0 + $0x218] sm:$0xff]   ;;  %v2908_v44 = vld [vmem:[%s3744_s0 + $0x90] sm:$0xff]  }
  0x10   :  { %2644 = vmatprep.subr.bf16.mxu0 %v2868_v6  ;;  %2852 = vmatprep.subr.bf16.mxu1 %v2868_v6  ;;  %v2909_v45 = vld [vmem:[%s3744_s0 + $0x220] sm:$0xff]   ;;  %v2910_v46 = vld [vmem:[%s3744_s0 + $0x98] sm:$0xff]   ;;  %v2911_v47 = vld [vmem:[%s3744_s0 + $0x228] sm:$0xff]  }
  0x11   :  { %v2912_v48 = vld [vmem:[%s3744_s0 + $0xa0] sm:$0xff]   ;;  %v2913_v49 = vld [vmem:[%s3744_s0 + $0x230] sm:$0xff]   ;;  %v2914_v50 = vld [vmem:[%s3744_s0 + $0xa8] sm:$0xff]  }
  0x12   :  { %v2915_v51 = vld [vmem:[%s3744_s0 + $0x238] sm:$0xff]   ;;  %v2916_v52 = vld [vmem:[%s3744_s0 + $0xb0] sm:$0xff]   ;;  %v2917_v53 = vld [vmem:[%s3744_s0 + $0x240] sm:$0xff]  }
  0x13   :  { %2645 = vmatpush3.bf16.msra.mxu0 %v2868_v6  ;;  %2860 = vmatpush3.bf16.msra.mxu1 %v2868_v6  ;;  %v2918_v54 = vld [vmem:[%s3744_s0 + $0xb8] sm:$0xff]   ;;  %v2919_v55 = vld [vmem:[%s3744_s0 + $0x248] sm:$0xff]   ;;  %v2920_v56 = vld [vmem:[%s3744_s0 + $0xc0] sm:$0xff]  }
  0x14   :  { %2646 = vmatprep.subr.bf16.mxu0 %v2869_v7  ;;  %2853 = vmatprep.subr.bf16.mxu1 %v2869_v7  ;;  %v2921_v57 = vld [vmem:[%s3744_s0 + $0x250] sm:$0xff]   ;;  %v2922_v58 = vld [vmem:[%s3744_s0 + $0xc8] sm:$0xff]   ;;  %v2923_v59 = vld [vmem:[%s3744_s0 + $0x258] sm:$0xff]  }
  0x15   :  { %v2924_v60 = vld [vmem:[%s3744_s0 + $0xd0] sm:$0xff]   ;;  %v2925_v61 = vld [vmem:[%s3744_s0 + $0x260] sm:$0xff]   ;;  %v2926_v62 = vld [vmem:[%s3744_s0 + $0xd8] sm:$0xff]  }
  0x16   :  { %v2927_v63 = vld [vmem:[%s3744_s0 + $0x268] sm:$0xff]   ;;  %v2928_v0 = vld [vmem:[%s3744_s0 + $0xe0] sm:$0xff]   ;;  %v2929_v1 = vld [vmem:[%s3744_s0 + $0x270] sm:$0xff]  }
  0x17   :  { %2647 = vmatpush3.bf16.msra.mxu0 %v2869_v7  ;;  %2861 = vmatpush3.bf16.msra.mxu1 %v2869_v7  ;;  %v2930_v2 = vld [vmem:[%s3744_s0 + $0xe8] sm:$0xff]   ;;  %v2931_v3 = vld [vmem:[%s3744_s0 + $0x278] sm:$0xff]   ;;  %v2932_v4 = vld [vmem:[%s3744_s0 + $0xf0] sm:$0xff]  }
  0x18   :  { %2648 = vmatprep.subr.bf16.mxu0 %v2870_v8  ;;  %2854 = vmatprep.subr.bf16.mxu1 %v2870_v8  ;;  %v2933_v5 = vld [vmem:[%s3744_s0 + $0x280] sm:$0xff]   ;;  %v2934_v6 = vld [vmem:[%s3744_s0 + $0xf8] sm:$0xff]   ;;  %v2935_v7 = vld [vmem:[%s3744_s0 + $0x288] sm:$0xff]  }
  0x1b   :  { %2649 = vmatpush3.bf16.msra.mxu0 %v2870_v8  ;;  %2862 = vmatpush3.bf16.msra.mxu1 %v2870_v8  ;;  %v2936_v8 = vld [vmem:[%s3744_s0 + $0x100] sm:$0xff]  }
  0x1c   :  { %2650 = vmatprep.subr.bf16.mxu0 %v2871_v9  ;;  %2855 = vmatprep.subr.bf16.mxu1 %v2871_v9 }
  0x1f   :  { %2651 = vmatpush3.bf16.msra.mxu0 %v2871_v9  ;;  %2863 = vmatpush3.bf16.msra.mxu1 %v2871_v9  ;;  %v2937_v9 = vld [vmem:[%s3744_s0 + $0x290] sm:$0xff]  }
  0x22   :  { %2653 = vmatmul.mubr.bf16.vlgmr.msra.gmra.mrb[0].mxu0 %v2874_v10  ;;  %2753 = vmatmul.mubr.bf16.vlgmr.msra.gmra.mrb[0].mxu1 %v2875_v11  ;;  %v2938_v10 = vld [vmem:[%s3744_s0 + $0x108] sm:$0xff]   ;;  %v2939_v11 = vld [vmem:[%s3744_s0 + $0x298] sm:$0xff]  }
  0x23   :  { %2656 = vmatprep.mubr.bf16.mxu0 %v2876_v12  ;;  %2756 = vmatprep.mubr.bf16.mxu1 %v2877_v13  ;;  %v2940_v12 = vld [vmem:[%s3744_s0 + $0x110] sm:$0xff]   ;;  %v2941_v13 = vld [vmem:[%s3744_s0 + $0x2a0] sm:$0xff]  }
  0x2a   :  { %2657 = vmatmul.mubr.bf16.gmra.mrb[4].mxu0 %v2878_v14  ;;  %2757 = vmatmul.mubr.bf16.gmra.mrb[4].mxu1 %v2879_v15  ;;  %v2942_v14 = vld [vmem:[%s3744_s0 + $0x118] sm:$0xff]   ;;  %v2943_v15 = vld [vmem:[%s3744_s0 + $0x2a8] sm:$0xff]  }
  0x2b   :  { %2660 = vmatprep.mubr.bf16.mxu0 %v2880_v16  ;;  %2760 = vmatprep.mubr.bf16.mxu1 %v2881_v17  ;;  %v2944_v16 = vld [vmem:[%s3744_s0 + $0x120] sm:$0xff]   ;;  %v2945_v17 = vld [vmem:[%s3744_s0 + $0x2b0] sm:$0xff]  }
  0x32   :  { %2661 = vmatmul.mubr.bf16.gmra.mrb[8].mxu0 %v2882_v18  ;;  %2761 = vmatmul.mubr.bf16.gmra.mrb[8].mxu1 %v2883_v19  ;;  %v2946_v18 = vld [vmem:[%s3744_s0 + $0x128] sm:$0xff]   ;;  %v2947_v19 = vld [vmem:[%s3744_s0 + $0x2b8] sm:$0xff]  }
  0x33   :  { %2664 = vmatprep.mubr.bf16.mxu0 %v2884_v20  ;;  %2764 = vmatprep.mubr.bf16.mxu1 %v2885_v21  ;;  %v2948_v20 = vld [vmem:[%s3744_s0 + $0x130] sm:$0xff]   ;;  %v2949_v21 = vld [vmem:[%s3744_s0 + $0x2c0] sm:$0xff]  }
  0x3a   :  { %2665 = vmatmul.mubr.bf16.gmra.mrb[12].mxu0 %v2886_v22  ;;  %2765 = vmatmul.mubr.bf16.gmra.mrb[12].mxu1 %v2887_v23  ;;  %v2950_v22 = vld [vmem:[%s3744_s0 + $0x138] sm:$0xff]   ;;  %v2951_v23 = vld [vmem:[%s3744_s0 + $0x2c8] sm:$0xff]  }
  0x3b   :  { %2668 = vmatprep.mubr.bf16.mxu0 %v2888_v24  ;;  %2768 = vmatprep.mubr.bf16.mxu1 %v2889_v25  ;;  %v2952_v24 = vld [vmem:[%s3744_s0 + $0x140] sm:$0xff]   ;;  %v2953_v25 = vld [vmem:[%s3744_s0 + $0x2d0] sm:$0xff]  }
  0x42   :  { %2669 = vmatmul.mubr.bf16.gmra.mrb[16].mxu0 %v2890_v26  ;;  %2769 = vmatmul.mubr.bf16.gmra.mrb[16].mxu1 %v2891_v27  ;;  %v2954_v26 = vld [vmem:[%s3744_s0 + $0x148] sm:$0xff]   ;;  %v2955_v27 = vld [vmem:[%s3744_s0 + $0x2d8] sm:$0xff]  }
  0x43   :  { %2672 = vmatprep.mubr.bf16.mxu0 %v2892_v28  ;;  %2772 = vmatprep.mubr.bf16.mxu1 %v2893_v29  ;;  %v2956_v28 = vld [vmem:[%s3744_s0 + $0x150] sm:$0xff]   ;;  %v2957_v29 = vld [vmem:[%s3744_s0 + $0x2e0] sm:$0xff]  }
  0x4a   :  { %2673 = vmatmul.mubr.bf16.gmra.mrb[20].mxu0 %v2894_v30  ;;  %2773 = vmatmul.mubr.bf16.gmra.mrb[20].mxu1 %v2895_v31  ;;  %v2958_v30 = vld [vmem:[%s3744_s0 + $0x158] sm:$0xff]   ;;  %v2959_v31 = vld [vmem:[%s3744_s0 + $0x2e8] sm:$0xff]  }
  0x4b   :  { %2676 = vmatprep.mubr.bf16.mxu0 %v2896_v32  ;;  %2776 = vmatprep.mubr.bf16.mxu1 %v2897_v33  ;;  %v2960_v32 = vld [vmem:[%s3744_s0 + $0x160] sm:$0xff]   ;;  %v2961_v33 = vld [vmem:[%s3744_s0 + $0x2f0] sm:$0xff]  }
  0x52   :  { %2677 = vmatmul.mubr.bf16.gmra.mrb[24].mxu0 %v2898_v34  ;;  %2777 = vmatmul.mubr.bf16.gmra.mrb[24].mxu1 %v2899_v35  ;;  %v2962_v34 = vld [vmem:[%s3744_s0 + $0x168] sm:$0xff]   ;;  %v2963_v35 = vld [vmem:[%s3744_s0 + $0x2f8] sm:$0xff]  }
  0x53   :  { %2680 = vmatprep.mubr.bf16.mxu0 %v2900_v36  ;;  %2780 = vmatprep.mubr.bf16.mxu1 %v2901_v37  ;;  %v2964_v36 = vld [vmem:[%s3744_s0 + $0x170] sm:$0xff]   ;;  %v2965_v37 = vld [vmem:[%s3744_s0 + $0x300] sm:$0xff]  }
  0x5a   :  { %2681 = vmatmul.mubr.bf16.gmra.mrb[28].mxu0 %v2902_v38  ;;  %2781 = vmatmul.mubr.bf16.gmra.mrb[28].mxu1 %v2903_v39  ;;  %v2966_v38 = vld [vmem:[%s3744_s0 + $0x178] sm:$0xff]   ;;  %v2967_v39 = vld [vmem:[%s3744_s0 + $0x308] sm:$0xff]  }
  0x5b   :  { %2684 = vmatprep.mubr.bf16.mxu0 %v2904_v40  ;;  %2784 = vmatprep.mubr.bf16.mxu1 %v2905_v41  ;;  %v2968_v40 = vld [vmem:[%s3744_s0 + $0x180] sm:$0xff]   ;;  %v2969_v41 = vld [vmem:[%s3744_s0 + $0x188] sm:$0xff]  }
  0x62   :  { %2685 = vmatmul.mubr.bf16.gmra.mrb[32].mxu0 %v2906_v42  ;;  %2785 = vmatmul.mubr.bf16.gmra.mrb[32].mxu1 %v2907_v43 }
  0x63   :  { %2688 = vmatprep.mubr.bf16.mxu0 %v2908_v44  ;;  %2788 = vmatprep.mubr.bf16.mxu1 %v2909_v45 }
  0x6a   :  { %2689 = vmatmul.mubr.bf16.gmra.mrb[36].mxu0 %v2910_v46  ;;  %2789 = vmatmul.mubr.bf16.gmra.mrb[36].mxu1 %v2911_v47 }
  0x6b   :  { %2692 = vmatprep.mubr.bf16.mxu0 %v2912_v48  ;;  %2792 = vmatprep.mubr.bf16.mxu1 %v2913_v49 }
  0x72   :  { %2693 = vmatmul.mubr.bf16.gmra.mrb[40].mxu0 %v2914_v50  ;;  %2793 = vmatmul.mubr.bf16.gmra.mrb[40].mxu1 %v2915_v51 }
  0x73   :  { %2696 = vmatprep.mubr.bf16.mxu0 %v2916_v52  ;;  %2796 = vmatprep.mubr.bf16.mxu1 %v2917_v53 }
  0x7a   :  { %2697 = vmatmul.mubr.bf16.gmra.mrb[44].mxu0 %v2918_v54  ;;  %2797 = vmatmul.mubr.bf16.gmra.mrb[44].mxu1 %v2919_v55 }
  0x7b   :  { %2700 = vmatprep.mubr.bf16.mxu0 %v2920_v56  ;;  %2800 = vmatprep.mubr.bf16.mxu1 %v2921_v57 }
  0x82   :  { %2701 = vmatmul.mubr.bf16.gmra.mrb[48].mxu0 %v2922_v58  ;;  %2801 = vmatmul.mubr.bf16.gmra.mrb[48].mxu1 %v2923_v59 }
  0x83   :  { %2704 = vmatprep.mubr.bf16.mxu0 %v2924_v60  ;;  %2804 = vmatprep.mubr.bf16.mxu1 %v2925_v61 }
  0x8a   :  { %2705 = vmatmul.mubr.bf16.gmra.mrb[52].mxu0 %v2926_v62  ;;  %2805 = vmatmul.mubr.bf16.gmra.mrb[52].mxu1 %v2927_v63 }
  0x8b   :  { %2708 = vmatprep.mubr.bf16.mxu0 %v2928_v0  ;;  %2808 = vmatprep.mubr.bf16.mxu1 %v2929_v1 }
  0x92   :  { %2709 = vmatmul.mubr.bf16.gmra.mrb[56].mxu0 %v2930_v2  ;;  %2809 = vmatmul.mubr.bf16.gmra.mrb[56].mxu1 %v2931_v3 }
  0x93   :  { %2712 = vmatprep.mubr.bf16.mxu0 %v2932_v4  ;;  %2812 = vmatprep.mubr.bf16.mxu1 %v2933_v5 }
  0x9a   :  { %2713 = vmatmul.mubr.bf16.gmra.mrb[60].mxu0 %v2934_v6  ;;  %2813 = vmatmul.mubr.bf16.gmra.mrb[60].mxu1 %v2935_v7 }
  0x9b   :  { %2716 = vmatprep.mubr.bf16.mxu0 %v2936_v8  ;;  %2816 = vmatprep.mubr.bf16.mxu1 %v2937_v9 }
  0xa2   :  { %2717 = vmatmul.mubr.bf16.gmra.mrb[64].mxu0 %v2938_v10  ;;  %2817 = vmatmul.mubr.bf16.gmra.mrb[64].mxu1 %v2939_v11 }
  0xa3   :  { %2720 = vmatprep.mubr.bf16.mxu0 %v2940_v12  ;;  %2820 = vmatprep.mubr.bf16.mxu1 %v2941_v13 }
  0xaa   :  { %2721 = vmatmul.mubr.bf16.gmra.mrb[68].mxu0 %v2942_v14  ;;  %2821 = vmatmul.mubr.bf16.gmra.mrb[68].mxu1 %v2943_v15 }
  0xab   :  { %2724 = vmatprep.mubr.bf16.mxu0 %v2944_v16  ;;  %2824 = vmatprep.mubr.bf16.mxu1 %v2945_v17 }
  0xb2   :  { %2725 = vmatmul.mubr.bf16.gmra.mrb[72].mxu0 %v2946_v18  ;;  %2825 = vmatmul.mubr.bf16.gmra.mrb[72].mxu1 %v2947_v19 }
  0xb3   :  { %2728 = vmatprep.mubr.bf16.mxu0 %v2948_v20  ;;  %2828 = vmatprep.mubr.bf16.mxu1 %v2949_v21 }
  0xba   :  { %2729 = vmatmul.mubr.bf16.gmra.mrb[76].mxu0 %v2950_v22  ;;  %2829 = vmatmul.mubr.bf16.gmra.mrb[76].mxu1 %v2951_v23 }
  0xbb   :  { %2732 = vmatprep.mubr.bf16.mxu0 %v2952_v24  ;;  %2832 = vmatprep.mubr.bf16.mxu1 %v2953_v25 }
  0xc2   :  { %2733 = vmatmul.mubr.bf16.gmra.mrb[80].mxu0 %v2954_v26  ;;  %2833 = vmatmul.mubr.bf16.gmra.mrb[80].mxu1 %v2955_v27 }
  0xc3   :  { %2736 = vmatprep.mubr.bf16.mxu0 %v2956_v28  ;;  %2836 = vmatprep.mubr.bf16.mxu1 %v2957_v29 }
  0xca   :  { %2737 = vmatmul.mubr.bf16.gmra.mrb[84].mxu0 %v2958_v30  ;;  %2837 = vmatmul.mubr.bf16.gmra.mrb[84].mxu1 %v2959_v31 }
  0xcb   :  { %2740 = vmatprep.mubr.bf16.mxu0 %v2960_v32  ;;  %2840 = vmatprep.mubr.bf16.mxu1 %v2961_v33 }
  0xd2   :  { %2741 = vmatmul.mubr.bf16.gmra.mrb[88].mxu0 %v2962_v34  ;;  %2841 = vmatmul.mubr.bf16.gmra.mrb[88].mxu1 %v2963_v35 }
  0xd3   :  { %2744 = vmatprep.mubr.bf16.mxu0 %v2964_v36  ;;  %2844 = vmatprep.mubr.bf16.mxu1 %v2965_v37 }
  0xda   :  { %2745 = vmatmul.mubr.bf16.gmra.mrb[92].mxu0 %v2966_v38  ;;  %2845 = vmatmul.mubr.bf16.gmra.mrb[92].mxu1 %v2967_v39 }
  0xdb   :  { %2748 = vmatprep.mubr.bf16.mxu0 %v2968_v40 }
  0xe2   :  { %2749 = vmatmul.mubr.bf16.gmra.mrb[96].mxu0 %v2969_v41 }
  0xf5   :  { %v3308_v42 = vpop.f32.mrb[0].mxu0  ;;  %v3310_v43 = vpop.f32.mrb[0].mxu1 }
  0xf6   :  { %v3312_v44 = vpop.f32.mrb[1].mxu0  ;;  %v3314_v45 = vpop.f32.mrb[1].mxu1 }
  0xf7   :  { %3751 = vst [vmem:[#allocation2_spill] sm:$0xff] %v3312_v44  ;;  %v3316_v46 = vpop.f32.mrb[2].mxu0  ;;  %v3318_v47 = vpop.f32.mrb[2].mxu1 }
  0xf8   :  { %v3320_v48 = vpop.f32.mrb[3].mxu0  ;;  %v3322_v49 = vpop.f32.mrb[3].mxu1 }
  0xf9   :  { %3752 = vst [vmem:[#allocation3_spill] sm:$0xff] %v3320_v48 }
  0xfd   :  { %v3324_v50 = vpop.f32.mrb[4].mxu0  ;;  %v3326_v51 = vpop.f32.mrb[4].mxu1 }
  0xfe   :  { %v3328_v52 = vpop.f32.mrb[5].mxu0  ;;  %v3330_v53 = vpop.f32.mrb[5].mxu1 }
  0xff   :  { %v3332_v54 = vpop.f32.mrb[6].mxu0  ;;  %v3334_v55 = vpop.f32.mrb[6].mxu1 }
 0x100   :  { %v3336_v56 = vpop.f32.mrb[7].mxu0  ;;  %v3338_v57 = vpop.f32.mrb[7].mxu1 }
 0x105   :  { %v3340_v58 = vpop.f32.mrb[8].mxu0  ;;  %v3342_v59 = vpop.f32.mrb[8].mxu1 }
 0x106   :  { %v3344_v60 = vpop.f32.mrb[9].mxu0  ;;  %v3346_v61 = vpop.f32.mrb[9].mxu1 }
 0x107   :  { %v3348_v62 = vpop.f32.mrb[10].mxu0  ;;  %v3350_v63 = vpop.f32.mrb[10].mxu1 }
 0x108   :  { %v3352_v0 = vpop.f32.mrb[11].mxu0  ;;  %v3354_v1 = vpop.f32.mrb[11].mxu1 }
 0x10d   :  { %v3356_v2 = vpop.f32.mrb[12].mxu0  ;;  %v3358_v3 = vpop.f32.mrb[12].mxu1 }
 0x10e   :  { %v3360_v4 = vpop.f32.mrb[13].mxu0  ;;  %v3362_v5 = vpop.f32.mrb[13].mxu1 }
 0x10f   :  { %v3364_v6 = vpop.f32.mrb[14].mxu0  ;;  %v3366_v7 = vpop.f32.mrb[14].mxu1 }
 0x110   :  { %v3368_v8 = vpop.f32.mrb[15].mxu0  ;;  %v3370_v9 = vpop.f32.mrb[15].mxu1 }
 0x115   :  { %v3372_v10 = vpop.f32.mrb[16].mxu0  ;;  %v3374_v11 = vpop.f32.mrb[16].mxu1 }
 0x116   :  { %v3376_v12 = vpop.f32.mrb[17].mxu0  ;;  %v3378_v13 = vpop.f32.mrb[17].mxu1 }
 0x117   :  { %v3380_v14 = vpop.f32.mrb[18].mxu0  ;;  %v3382_v15 = vpop.f32.mrb[18].mxu1 }
 0x118   :  { %v3384_v16 = vpop.f32.mrb[19].mxu0  ;;  %v3386_v17 = vpop.f32.mrb[19].mxu1 }
 0x11d   :  { %v3388_v18 = vpop.f32.mrb[20].mxu0  ;;  %v3390_v19 = vpop.f32.mrb[20].mxu1 }
 0x11e   :  { %v3392_v20 = vpop.f32.mrb[21].mxu0  ;;  %v3394_v21 = vpop.f32.mrb[21].mxu1 }
 0x11f   :  { %v3396_v22 = vpop.f32.mrb[22].mxu0  ;;  %v3398_v23 = vpop.f32.mrb[22].mxu1 }
 0x120   :  { %v3400_v24 = vpop.f32.mrb[23].mxu0  ;;  %v3402_v25 = vpop.f32.mrb[23].mxu1 }
 0x125   :  { %v3404_v26 = vpop.f32.mrb[24].mxu0  ;;  %v3406_v27 = vpop.f32.mrb[24].mxu1 }
 0x126   :  { %3753 = vst [vmem:[#allocation4_spill] sm:$0xff] %v3404_v26  ;;  %3754 = vst [vmem:[#allocation5_spill] sm:$0xff] %v3406_v27  ;;  %v3408_v28 = vpop.f32.mrb[25].mxu0  ;;  %v3410_v29 = vpop.f32.mrb[25].mxu1 }
 0x127   :  { %3755 = vst [vmem:[#allocation6_spill] sm:$0xff] %v3408_v28  ;;  %3756 = vst [vmem:[#allocation7_spill] sm:$0xff] %v3410_v29  ;;  %v3412_v30 = vpop.f32.mrb[26].mxu0  ;;  %v3414_v31 = vpop.f32.mrb[26].mxu1 }
 0x128   :  { %3757 = vst [vmem:[#allocation8_spill] sm:$0xff] %v3412_v30  ;;  %3758 = vst [vmem:[#allocation9_spill] sm:$0xff] %v3414_v31  ;;  %v3416_v32 = vpop.f32.mrb[27].mxu0  ;;  %v3418_v33 = vpop.f32.mrb[27].mxu1 }
 0x12d   :  { %v3420_v34 = vpop.f32.mrb[28].mxu0  ;;  %v3422_v35 = vpop.f32.mrb[28].mxu1 }
 0x12e   :  { %3759 = vst [vmem:[#allocation10_spill] sm:$0xff] %v3420_v34  ;;  %3760 = vst [vmem:[#allocation11_spill] sm:$0xff] %v3422_v35  ;;  %v3424_v36 = vpop.f32.mrb[29].mxu0  ;;  %v3426_v37 = vpop.f32.mrb[29].mxu1 }
 0x12f   :  { %3761 = vst [vmem:[#allocation12_spill] sm:$0xff] %v3424_v36  ;;  %3762 = vst [vmem:[#allocation13_spill] sm:$0xff] %v3426_v37  ;;  %v3428_v38 = vpop.f32.mrb[30].mxu0  ;;  %v3430_v39 = vpop.f32.mrb[30].mxu1 }
 0x130   :  { %3763 = vst [vmem:[#allocation14_spill] sm:$0xff] %v3428_v38  ;;  %3764 = vst [vmem:[#allocation15_spill] sm:$0xff] %v3430_v39  ;;  %v3432_v40 = vpop.f32.mrb[31].mxu0  ;;  %v3434_v41 = vpop.f32.mrb[31].mxu1 }
 0x131   :  { %3765 = vst [vmem:[#allocation16_spill] sm:$0xff] %v3432_v40  ;;  %3766 = vst [vmem:[#allocation17_spill] sm:$0xff] %v3434_v41 }
 0x135   :  { %v3436_v31 = vpop.f32.mrb[32].mxu0  ;;  %v3438_v30 = vpop.f32.mrb[32].mxu1 }
 0x136   :  { %3767 = vst [vmem:[#allocation18_spill] sm:$0xff] %v3436_v31  ;;  %3768 = vst [vmem:[#allocation19_spill] sm:$0xff] %v3438_v30  ;;  %v3440_v29 = vpop.f32.mrb[33].mxu0  ;;  %v3442_v34 = vpop.f32.mrb[33].mxu1 }
 0x137   :  { %3769 = vst [vmem:[#allocation20_spill] sm:$0xff] %v3440_v29  ;;  %3770 = vst [vmem:[#allocation21_spill] sm:$0xff] %v3442_v34  ;;  %v3444_v35 = vpop.f32.mrb[34].mxu0  ;;  %v3446_v36 = vpop.f32.mrb[34].mxu1 }
 0x138   :  { %3771 = vst [vmem:[#allocation22_spill] sm:$0xff] %v3444_v35  ;;  %3772 = vst [vmem:[#allocation23_spill] sm:$0xff] %v3446_v36  ;;  %v3448_v37 = vpop.f32.mrb[35].mxu0  ;;  %v3450_v38 = vpop.f32.mrb[35].mxu1 }
 0x139   :  { %3773 = vst [vmem:[#allocation24_spill] sm:$0xff] %v3448_v37  ;;  %3774 = vst [vmem:[#allocation25_spill] sm:$0xff] %v3450_v38 }
 0x13d   :  { %v3452_v39 = vpop.f32.mrb[36].mxu0  ;;  %v3454_v40 = vpop.f32.mrb[36].mxu1 }
 0x13e   :  { %3775 = vst [vmem:[#allocation26_spill] sm:$0xff] %v3452_v39  ;;  %3776 = vst [vmem:[#allocation27_spill] sm:$0xff] %v3454_v40  ;;  %v3456_v41 = vpop.f32.mrb[37].mxu0  ;;  %v3458_v31 = vpop.f32.mrb[37].mxu1 }
 0x13f   :  { %3777 = vst [vmem:[#allocation28_spill] sm:$0xff] %v3456_v41  ;;  %3778 = vst [vmem:[#allocation29_spill] sm:$0xff] %v3458_v31  ;;  %v3460_v30 = vpop.f32.mrb[38].mxu0  ;;  %v3462_v29 = vpop.f32.mrb[38].mxu1 }
 0x140   :  { %3779 = vst [vmem:[#allocation30_spill] sm:$0xff] %v3460_v30  ;;  %3780 = vst [vmem:[#allocation31_spill] sm:$0xff] %v3462_v29  ;;  %v3464_v34 = vpop.f32.mrb[39].mxu0  ;;  %v3466_v35 = vpop.f32.mrb[39].mxu1 }
 0x141   :  { %3781 = vst [vmem:[#allocation32_spill] sm:$0xff] %v3464_v34  ;;  %3782 = vst [vmem:[#allocation33_spill] sm:$0xff] %v3466_v35 }
 0x145   :  { %v3468_v36 = vpop.f32.mrb[40].mxu0  ;;  %v3470_v37 = vpop.f32.mrb[40].mxu1 }
 0x146   :  { %3783 = vst [vmem:[#allocation34_spill] sm:$0xff] %v3468_v36  ;;  %3784 = vst [vmem:[#allocation35_spill] sm:$0xff] %v3470_v37  ;;  %v3472_v38 = vpop.f32.mrb[41].mxu0  ;;  %v3474_v39 = vpop.f32.mrb[41].mxu1 }
 0x147   :  { %3785 = vst [vmem:[#allocation36_spill] sm:$0xff] %v3472_v38  ;;  %3786 = vst [vmem:[#allocation37_spill] sm:$0xff] %v3474_v39  ;;  %v3476_v40 = vpop.f32.mrb[42].mxu0  ;;  %v3478_v41 = vpop.f32.mrb[42].mxu1 }
 0x148   :  { %3787 = vst [vmem:[#allocation38_spill] sm:$0xff] %v3476_v40  ;;  %3788 = vst [vmem:[#allocation39_spill] sm:$0xff] %v3478_v41  ;;  %v3480_v31 = vpop.f32.mrb[43].mxu0  ;;  %v3482_v30 = vpop.f32.mrb[43].mxu1 }
 0x149   :  { %3789 = vst [vmem:[#allocation40_spill] sm:$0xff] %v3480_v31  ;;  %3790 = vst [vmem:[#allocation41_spill] sm:$0xff] %v3482_v30 }
 0x14d   :  { %v3484_v29 = vpop.f32.mrb[44].mxu0  ;;  %v3486_v34 = vpop.f32.mrb[44].mxu1 }
 0x14e   :  { %3791 = vst [vmem:[#allocation42_spill] sm:$0xff] %v3484_v29  ;;  %3792 = vst [vmem:[#allocation43_spill] sm:$0xff] %v3486_v34  ;;  %v3488_v35 = vpop.f32.mrb[45].mxu0  ;;  %v3490_v36 = vpop.f32.mrb[45].mxu1 }
 0x14f   :  { %3793 = vst [vmem:[#allocation44_spill] sm:$0xff] %v3488_v35  ;;  %3794 = vst [vmem:[#allocation45_spill] sm:$0xff] %v3490_v36  ;;  %v3492_v37 = vpop.f32.mrb[46].mxu0  ;;  %v3494_v38 = vpop.f32.mrb[46].mxu1 }
 0x150   :  { %3795 = vst [vmem:[#allocation46_spill] sm:$0xff] %v3492_v37  ;;  %3796 = vst [vmem:[#allocation47_spill] sm:$0xff] %v3494_v38  ;;  %v3496_v39 = vpop.f32.mrb[47].mxu0  ;;  %v3498_v40 = vpop.f32.mrb[47].mxu1 }
 0x151   :  { %3797 = vst [vmem:[#allocation48_spill] sm:$0xff] %v3496_v39  ;;  %3798 = vst [vmem:[#allocation49_spill] sm:$0xff] %v3498_v40 }
 0x155   :  { %v3500_v41 = vpop.f32.mrb[48].mxu0  ;;  %v2802_v31 = vpop.f32.mrb[48].mxu1 }
 0x156   :  { %3799 = vst [vmem:[#allocation50_spill] sm:$0xff] %v3500_v41  ;;  %v1732_v34 = vmax.f32 %v3322_v49, %v2802_v31  ;;  %v3505_v30 = vpop.f32.mrb[49].mxu0  ;;  %v3507_v35 = vpop.f32.mrb[49].mxu1  ;;  %v3519_v49 = vld [vmem:[%s3745_s2] ss:$0 sm:$0xff] }
 0x157   :  { %3800 = vst [vmem:[#allocation51_spill] sm:$0xff] %v3505_v30  ;;  %3801 = vst [vmem:[#allocation52_spill] sm:$0xff] %v3507_v35  ;;  %v2703_v36 = vpop.f32.mrb[50].mxu0  ;;  %v2803_v37 = vpop.f32.mrb[50].mxu1 }
 0x158   :  { %v1682_v38 = vmax.f32 %v3308_v42, %v2703_v36  ;;  %v1733_v39 = vmax.f32 %v3310_v43, %v2803_v37  ;;  %v3511_v28 = vpop.f32.mrb[51].mxu0  ;;  %v1492_v40 = vpop.f32.mrb[51].mxu1 }
 0x159   :  { %3802 = vst [vmem:[#allocation53_spill] sm:$0xff] %v3511_v28  ;;  %v1731_v29 = vmax.f32 %v3314_v45, %v1492_v40 }
 0x15b   :  { %v1780_v41 = vmax.f32 %v1682_v38, %v1731_v29 }
 0x15d   :  { %v2706_v31 = vpop.f32.mrb[52].mxu0  ;;  %v2806_v48 = vpop.f32.mrb[52].mxu1  ;;  %v1836_v29 = vadd.f32 %v3519_v49, %v1780_v41 }
 0x15e   :  { %v1685_v42 = vmax.f32 %v3336_v56, %v2706_v31  ;;  %v1736_v43 = vmax.f32 %v3338_v57, %v2806_v48  ;;  %v1105_v36 = vpop.f32.mrb[53].mxu0  ;;  %v1505_v37 = vpop.f32.mrb[53].mxu1 }
 0x15f   :  { %v1683_v30 = vmax.f32 %v3316_v46, %v1105_v36  ;;  %v1734_v27 = vmax.f32 %v3318_v47, %v1505_v37  ;;  %v2707_v35 = vpop.f32.mrb[54].mxu0  ;;  %v2807_v45 = vpop.f32.mrb[54].mxu1  ;;  %v1885_v37 = vmax.f32 %v1836_v29, 0.0 }
 0x160   :  { %v1686_v38 = vmax.f32 %v3324_v50, %v2707_v35  ;;  %v1737_v40 = vmax.f32 %v3326_v51, %v2807_v45  ;;  %v1108_v28 = vpop.f32.mrb[55].mxu0  ;;  %v1508_v44 = vpop.f32.mrb[55].mxu1 }
 0x161   :  { %v1781_v26 = vmax.f32 %v1683_v30, %v1732_v34  ;;  %v1783_v56 = vmax.f32 %v1685_v42, %v1734_v27  ;;  %v1684_v48 = vmax.f32 %v3328_v52, %v1108_v28  ;;  %v1735_v57 = vmax.f32 %v3330_v53, %v1508_v44 }
 0x163   :  { %v1837_v46 = vadd.f32 %v3519_v49, %v1781_v26  ;;  %v1839_v47 = vadd.f32 %v3519_v49, %v1783_v56  ;;  %v1782_v31 = vmax.f32 %v1684_v48, %v1733_v39  ;;  %v1784_v36 = vmax.f32 %v1686_v38, %v1735_v57 }
 0x165   :  { %v1886_v41 = vmax.f32 %v1837_v46, 0.0  ;;  %v1838_v50 = vadd.f32 %v3519_v49, %v1782_v31  ;;  %v2710_v35 = vpop.f32.mrb[56].mxu0  ;;  %v2810_v51 = vpop.f32.mrb[56].mxu1  ;;  %v1888_v44 = vmax.f32 %v1839_v47, 0.0  ;;  %v1840_v42 = vadd.f32 %v3519_v49, %v1784_v36 }
 0x166   :  { %v1689_v45 = vmax.f32 %v3352_v0, %v2710_v35  ;;  %v1740_v27 = vmax.f32 %v3354_v1, %v2810_v51  ;;  %v1121_v30 = vpop.f32.mrb[57].mxu0  ;;  %v1521_v52 = vpop.f32.mrb[57].mxu1 }
 0x167   :  { %v2395_v28 = vpack.c.bf16 %v1886_v41, %v1885_v37  ;;  %v1887_v53 = vmax.f32 %v1838_v50, 0.0  ;;  %v1687_v26 = vmax.f32 %v3332_v54, %v1121_v30  ;;  %v2711_v34 = vpop.f32.mrb[58].mxu0  ;;  %v2811_v39 = vpop.f32.mrb[58].mxu1  ;;  %v1738_v29 = vmax.f32 %v3334_v55, %v1521_v52 }
 0x168   :  { %v1690_v38 = vmax.f32 %v3340_v58, %v2711_v34  ;;  %v1741_v56 = vmax.f32 %v3342_v59, %v2811_v39  ;;  %v1124_v0 = vpop.f32.mrb[59].mxu0  ;;  %v1524_v48 = vpop.f32.mrb[59].mxu1  ;;  %v1889_v36 = vmax.f32 %v1840_v42, 0.0 }
 0x169   :  { %2507 = vst [vmem:[%s3746_s3 + $0x8] sm:$0xff] %v2395_v28   ;;  %v2400_v1 = vpack.c.bf16 %v1888_v44, %v1887_v53  ;;  %v1785_v57 = vmax.f32 %v1687_v26, %v1736_v43  ;;  %v1688_v54 = vmax.f32 %v3344_v60, %v1124_v0  ;;  %v1739_v46 = vmax.f32 %v3346_v61, %v1524_v48 }
 0x16a   :  { %v1787_v47 = vmax.f32 %v1689_v45, %v1738_v29 }
 0x16b   :  { %2508 = vst [vmem:[%s3746_s3 + $0x10] sm:$0xff] %v2400_v1   ;;  %v1841_v55 = vadd.f32 %v3519_v49, %v1785_v57  ;;  %v1786_v58 = vmax.f32 %v1688_v54, %v1737_v40  ;;  %v1788_v59 = vmax.f32 %v1690_v38, %v1739_v46 }
 0x16c   :  { %v1843_v31 = vadd.f32 %v3519_v49, %v1787_v47 }
 0x16d   :  { %v1890_v37 = vmax.f32 %v1841_v55, 0.0  ;;  %v1842_v41 = vadd.f32 %v3519_v49, %v1786_v58  ;;  %v2714_v43 = vpop.f32.mrb[60].mxu0  ;;  %v2814_v50 = vpop.f32.mrb[60].mxu1  ;;  %v1844_v53 = vadd.f32 %v3519_v49, %v1788_v59 }
 0x16e   :  { %v1693_v60 = vmax.f32 %v3368_v8, %v2714_v43  ;;  %v1744_v61 = vmax.f32 %v3370_v9, %v2814_v50  ;;  %v1137_v35 = vpop.f32.mrb[61].mxu0  ;;  %v1537_v51 = vpop.f32.mrb[61].mxu1  ;;  %v1892_v30 = vmax.f32 %v1843_v31, 0.0 }
 0x16f   :  { %v2405_v45 = vpack.c.bf16 %v1890_v37, %v1889_v36  ;;  %v1891_v52 = vmax.f32 %v1842_v41, 0.0  ;;  %v1691_v40 = vmax.f32 %v3348_v62, %v1137_v35  ;;  %v2715_v28 = vpop.f32.mrb[62].mxu0  ;;  %v2815_v44 = vpop.f32.mrb[62].mxu1  ;;  %v1742_v26 = vmax.f32 %v3350_v63, %v1537_v51 }
 0x170   :  { %v1694_v34 = vmax.f32 %v3356_v2, %v2715_v28  ;;  %v1745_v39 = vmax.f32 %v3358_v3, %v2815_v44  ;;  %v1140_v8 = vpop.f32.mrb[63].mxu0  ;;  %v1540_v42 = vpop.f32.mrb[63].mxu1  ;;  %v1893_v1 = vmax.f32 %v1844_v53, 0.0 }
 0x171   :  { %2509 = vst [vmem:[%s3746_s3 + $0x18] sm:$0xff] %v2405_v45   ;;  %v2410_v9 = vpack.c.bf16 %v1892_v30, %v1891_v52  ;;  %v1789_v29 = vmax.f32 %v1691_v40, %v1740_v27  ;;  %v1692_v62 = vmax.f32 %v3360_v4, %v1140_v8  ;;  %v1743_v38 = vmax.f32 %v3362_v5, %v1540_v42 }
 0x172   :  { %v1791_v0 = vmax.f32 %v1693_v60, %v1742_v26 }
 0x173   :  { %2510 = vst [vmem:[%s3746_s3 + $0x20] sm:$0xff] %v2410_v9   ;;  %v1845_v63 = vadd.f32 %v3519_v49, %v1789_v29  ;;  %v1790_v2 = vmax.f32 %v1692_v62, %v1741_v56  ;;  %v1792_v3 = vmax.f32 %v1694_v34, %v1743_v38 }
 0x174   :  { %v1847_v48 = vadd.f32 %v3519_v49, %v1791_v0 }
 0x175   :  { %v1894_v57 = vmax.f32 %v1845_v63, 0.0  ;;  %v1846_v54 = vadd.f32 %v3519_v49, %v1790_v2  ;;  %v2718_v27 = vpop.f32.mrb[64].mxu0  ;;  %v2818_v46 = vpop.f32.mrb[64].mxu1  ;;  %v1848_v41 = vadd.f32 %v3519_v49, %v1792_v3 }
 0x176   :  { %v1697_v4 = vmax.f32 %v3384_v16, %v2718_v27  ;;  %v1748_v5 = vmax.f32 %v3386_v17, %v2818_v46  ;;  %v1153_v47 = vpop.f32.mrb[65].mxu0  ;;  %v1553_v55 = vpop.f32.mrb[65].mxu1  ;;  %v1896_v59 = vmax.f32 %v1847_v48, 0.0 }
 0x177   :  { %v2415_v58 = vpack.c.bf16 %v1894_v57, %v1893_v1  ;;  %v1895_v31 = vmax.f32 %v1846_v54, 0.0  ;;  %v1695_v56 = vmax.f32 %v3364_v6, %v1153_v47  ;;  %v2719_v36 = vpop.f32.mrb[66].mxu0  ;;  %v2819_v37 = vpop.f32.mrb[66].mxu1  ;;  %v1746_v43 = vmax.f32 %v3366_v7, %v1553_v55 }
 0x178   :  { %v1698_v50 = vmax.f32 %v3372_v10, %v2719_v36  ;;  %v1749_v60 = vmax.f32 %v3374_v11, %v2819_v37  ;;  %v1156_v16 = vpop.f32.mrb[67].mxu0  ;;  %v1556_v35 = vpop.f32.mrb[67].mxu1  ;;  %v1897_v40 = vmax.f32 %v1848_v41, 0.0 }
 0x179   :  { %2511 = vst [vmem:[%s3746_s3 + $0x28] sm:$0xff] %v2415_v58   ;;  %v2420_v17 = vpack.c.bf16 %v1896_v59, %v1895_v31  ;;  %v1793_v51 = vmax.f32 %v1695_v56, %v1744_v61  ;;  %v1696_v6 = vmax.f32 %v3376_v12, %v1156_v16  ;;  %v1747_v45 = vmax.f32 %v3378_v13, %v1556_v35  ;;  %v3804_v35 = vld [vmem:[#allocation5_spill] sm:$0xff] }
 0x17a   :  { %v1795_v30 = vmax.f32 %v1697_v4, %v1746_v43 }
 0x17b   :  { %2512 = vst [vmem:[%s3746_s3 + $0x30] sm:$0xff] %v2420_v17   ;;  %v1849_v7 = vadd.f32 %v3519_v49, %v1793_v51  ;;  %v1794_v10 = vmax.f32 %v1696_v6, %v1745_v39  ;;  %v1796_v11 = vmax.f32 %v1698_v50, %v1747_v45  ;;  %v3805_v45 = vld [vmem:[#allocation6_spill] sm:$0xff] }
 0x17c   :  { %v1851_v52 = vadd.f32 %v3519_v49, %v1795_v30  ;;  %v3806_v30 = vld [vmem:[#allocation7_spill] sm:$0xff] }
 0x17d   :  { %v1898_v28 = vmax.f32 %v1849_v7, 0.0  ;;  %v1850_v44 = vadd.f32 %v3519_v49, %v1794_v10  ;;  %v2722_v61 = vpop.f32.mrb[68].mxu0  ;;  %v2822_v53 = vpop.f32.mrb[68].mxu1  ;;  %v1852_v38 = vadd.f32 %v3519_v49, %v1796_v11 }
 0x17e   :  { %v1701_v12 = vmax.f32 %v3400_v24, %v2722_v61  ;;  %v1752_v13 = vmax.f32 %v3402_v25, %v2822_v53  ;;  %v1169_v26 = vpop.f32.mrb[69].mxu0  ;;  %v1569_v34 = vpop.f32.mrb[69].mxu1  ;;  %v1900_v42 = vmax.f32 %v1851_v52, 0.0 }
 0x17f   :  { %v2425_v8 = vpack.c.bf16 %v1898_v28, %v1897_v40  ;;  %v1899_v9 = vmax.f32 %v1850_v44, 0.0  ;;  %v1699_v39 = vmax.f32 %v3380_v14, %v1169_v26  ;;  %v2723_v29 = vpop.f32.mrb[70].mxu0  ;;  %v2823_v62 = vpop.f32.mrb[70].mxu1  ;;  %v1750_v0 = vmax.f32 %v3382_v15, %v1569_v34  ;;  %v3808_v34 = vld [vmem:[#allocation17_spill] sm:$0xff] }
 0x180   :  { %v1702_v63 = vmax.f32 %v3388_v18, %v2723_v29  ;;  %v1753_v2 = vmax.f32 %v3390_v19, %v2823_v62  ;;  %v1172_v24 = vpop.f32.mrb[71].mxu0  ;;  %v1572_v3 = vpop.f32.mrb[71].mxu1  ;;  %v1901_v27 = vmax.f32 %v1852_v38, 0.0  ;;  %v3809_v38 = vld [vmem:[#allocation8_spill] sm:$0xff] }
 0x181   :  { %2513 = vst [vmem:[%s3746_s3 + $0x38] sm:$0xff] %v2425_v8   ;;  %v2430_v25 = vpack.c.bf16 %v1900_v42, %v1899_v9  ;;  %v1797_v48 = vmax.f32 %v1699_v39, %v1748_v5  ;;  %v1700_v14 = vmax.f32 %v3392_v20, %v1172_v24  ;;  %v1751_v1 = vmax.f32 %v3394_v21, %v1572_v3  ;;  %v3810_v3 = vld [vmem:[#allocation9_spill] sm:$0xff] }
 0x182   :  { %v1799_v57 = vmax.f32 %v1701_v12, %v1750_v0 }
 0x183   :  { %2514 = vst [vmem:[%s3746_s3 + $0x40] sm:$0xff] %v2430_v25   ;;  %v1853_v15 = vadd.f32 %v3519_v49, %v1797_v48  ;;  %v1798_v18 = vmax.f32 %v1700_v14, %v1749_v60  ;;  %v1800_v19 = vmax.f32 %v1702_v63, %v1751_v1  ;;  %v3803_v60 = vld [vmem:[#allocation4_spill] sm:$0xff]  ;;  %v3811_v48 = vld [vmem:[#allocation10_spill] sm:$0xff]  ;;  %v3812_v1 = vld [vmem:[#allocation11_spill] sm:$0xff] }
 0x184   :  { %v1855_v54 = vadd.f32 %v3519_v49, %v1799_v57 }
 0x185   :  { %v1902_v46 = vmax.f32 %v1853_v15, 0.0  ;;  %v1854_v4 = vadd.f32 %v3519_v49, %v1798_v18  ;;  %v2726_v5 = vpop.f32.mrb[72].mxu0  ;;  %v2826_v47 = vpop.f32.mrb[72].mxu1  ;;  %v1856_v43 = vadd.f32 %v3519_v49, %v1800_v19 }
 0x186   :  { %v1705_v20 = vmax.f32 %v3416_v32, %v2726_v5  ;;  %v1756_v21 = vmax.f32 %v3418_v33, %v2826_v47  ;;  %v1185_v55 = vpop.f32.mrb[73].mxu0  ;;  %v1585_v58 = vpop.f32.mrb[73].mxu1  ;;  %v1904_v31 = vmax.f32 %v1855_v54, 0.0 }
 0x187   :  { %v2435_v59 = vpack.c.bf16 %v1902_v46, %v1901_v27  ;;  %v1903_v56 = vmax.f32 %v1854_v4, 0.0  ;;  %v1703_v36 = vmax.f32 %v3396_v22, %v1185_v55  ;;  %v2727_v37 = vpop.f32.mrb[74].mxu0  ;;  %v2827_v41 = vpop.f32.mrb[74].mxu1  ;;  %v1754_v50 = vmax.f32 %v3398_v23, %v1585_v58  ;;  %v3813_v27 = vld [vmem:[#allocation12_spill] sm:$0xff]  ;;  %v3814_v4 = vld [vmem:[#allocation13_spill] sm:$0xff] }
 0x188   :  { %v1706_v16 = vmax.f32 %v3803_v60, %v2727_v37  ;;  %v1757_v17 = vmax.f32 %v3804_v35, %v2827_v41  ;;  %v1188_v32 = vpop.f32.mrb[75].mxu0  ;;  %v1588_v51 = vpop.f32.mrb[75].mxu1  ;;  %v1905_v28 = vmax.f32 %v1856_v43, 0.0  ;;  %v3815_v41 = vld [vmem:[#allocation24_spill] sm:$0xff] }
 0x189   :  { %2515 = vst [vmem:[%s3746_s3 + $0x48] sm:$0xff] %v2435_v59   ;;  %v2440_v33 = vpack.c.bf16 %v1904_v31, %v1903_v56  ;;  %v1801_v6 = vmax.f32 %v1703_v36, %v1752_v13  ;;  %v1704_v22 = vmax.f32 %v3805_v45, %v1188_v32  ;;  %v1755_v7 = vmax.f32 %v3806_v30, %v1588_v51  ;;  %v3807_v13 = vld [vmem:[#allocation16_spill] sm:$0xff] }
 0x18a   :  { %v1803_v10 = vmax.f32 %v1705_v20, %v1754_v50  ;;  %v3816_v50 = vld [vmem:[#allocation25_spill] sm:$0xff] }
 0x18b   :  { %2516 = vst [vmem:[%s3746_s3 + $0x50] sm:$0xff] %v2440_v33   ;;  %v1857_v23 = vadd.f32 %v3519_v49, %v1801_v6  ;;  %v1802_v11 = vmax.f32 %v1704_v22, %v1753_v2  ;;  %v1804_v52 = vmax.f32 %v1706_v16, %v1755_v7  ;;  %v3817_v6 = vld [vmem:[#allocation14_spill] sm:$0xff]  ;;  %v3818_v7 = vld [vmem:[#allocation15_spill] sm:$0xff] }
 0x18c   :  { %v1859_v40 = vadd.f32 %v3519_v49, %v1803_v10 }
 0x18d   :  { %v1906_v44 = vmax.f32 %v1857_v23, 0.0  ;;  %v1858_v61 = vadd.f32 %v3519_v49, %v1802_v11  ;;  %v2730_v53 = vpop.f32.mrb[76].mxu0  ;;  %v2830_v12 = vpop.f32.mrb[76].mxu1  ;;  %v1860_v24 = vadd.f32 %v3519_v49, %v1804_v52  ;;  %v3819_v23 = vld [vmem:[#allocation18_spill] sm:$0xff]  ;;  %v3820_v52 = vld [vmem:[#allocation19_spill] sm:$0xff] }
 0x18e   :  { %v1709_v26 = vmax.f32 %v3807_v13, %v2730_v53  ;;  %v1760_v8 = vmax.f32 %v3808_v34, %v2830_v12  ;;  %v1201_v42 = vpop.f32.mrb[77].mxu0  ;;  %v1601_v9 = vpop.f32.mrb[77].mxu1  ;;  %v1908_v29 = vmax.f32 %v1859_v40, 0.0  ;;  %v3821_v12 = vld [vmem:[#allocation20_spill] sm:$0xff] }
 0x18f   :  { %v2445_v39 = vpack.c.bf16 %v1906_v44, %v1905_v28  ;;  %v1907_v62 = vmax.f32 %v1858_v61, 0.0  ;;  %v1707_v0 = vmax.f32 %v3809_v38, %v1201_v42  ;;  %v2731_v63 = vpop.f32.mrb[78].mxu0  ;;  %v2831_v2 = vpop.f32.mrb[78].mxu1  ;;  %v1758_v25 = vmax.f32 %v3810_v3, %v1601_v9 }
 0x190   :  { %v1710_v14 = vmax.f32 %v3811_v48, %v2731_v63  ;;  %v1761_v57 = vmax.f32 %v3812_v1, %v2831_v2  ;;  %v1204_v15 = vpop.f32.mrb[79].mxu0  ;;  %v1604_v18 = vpop.f32.mrb[79].mxu1  ;;  %v1909_v31 = vmax.f32 %v1860_v24, 0.0  ;;  %v3823_v24 = vld [vmem:[#allocation32_spill] sm:$0xff] }
 0x191   :  { %2517 = vst [vmem:[%s3746_s3 + $0x58] sm:$0xff] %v2445_v39   ;;  %v2450_v19 = vpack.c.bf16 %v1908_v29, %v1907_v62  ;;  %v1805_v54 = vmax.f32 %v1707_v0, %v1756_v21  ;;  %v1708_v46 = vmax.f32 %v3813_v27, %v1204_v15  ;;  %v1759_v5 = vmax.f32 %v3814_v4, %v1604_v18 }
 0x192   :  { %v1807_v47 = vmax.f32 %v1709_v26, %v1758_v25  ;;  %v3822_v26 = vld [vmem:[#allocation21_spill] sm:$0xff] }
 0x193   :  { %2518 = vst [vmem:[%s3746_s3 + $0x60] sm:$0xff] %v2450_v19   ;;  %v1861_v20 = vadd.f32 %v3519_v49, %v1805_v54  ;;  %v1806_v55 = vmax.f32 %v1708_v46, %v1757_v17  ;;  %v1808_v58 = vmax.f32 %v1710_v14, %v1759_v5  ;;  %v3824_v25 = vld [vmem:[#allocation33_spill] sm:$0xff]  ;;  %v3825_v54 = vld [vmem:[#allocation22_spill] sm:$0xff]  ;;  %v3826_v5 = vld [vmem:[#allocation23_spill] sm:$0xff] }
 0x194   :  { %v1863_v59 = vadd.f32 %v3519_v49, %v1807_v47 }
 0x195   :  { %v1910_v56 = vmax.f32 %v1861_v20, 0.0  ;;  %v1862_v36 = vadd.f32 %v3519_v49, %v1806_v55  ;;  %v2734_v21 = vpop.f32.mrb[80].mxu0  ;;  %v2834_v37 = vpop.f32.mrb[80].mxu1  ;;  %v1864_v30 = vadd.f32 %v3519_v49, %v1808_v58  ;;  %v3827_v20 = vld [vmem:[#allocation26_spill] sm:$0xff]  ;;  %v3828_v58 = vld [vmem:[#allocation27_spill] sm:$0xff] }
 0x196   :  { %v1713_v43 = vmax.f32 %v3815_v41, %v2734_v21  ;;  %v1764_v60 = vmax.f32 %v3816_v50, %v2834_v37  ;;  %v1217_v16 = vpop.f32.mrb[81].mxu0  ;;  %v1617_v35 = vpop.f32.mrb[81].mxu1  ;;  %v1912_v51 = vmax.f32 %v1863_v59, 0.0  ;;  %v3829_v37 = vld [vmem:[#allocation28_spill] sm:$0xff] }
 0x197   :  { %v2455_v32 = vpack.c.bf16 %v1910_v56, %v1909_v31  ;;  %v1911_v33 = vmax.f32 %v1862_v36, 0.0  ;;  %v1711_v17 = vmax.f32 %v3817_v6, %v1217_v16  ;;  %v2735_v45 = vpop.f32.mrb[82].mxu0  ;;  %v2835_v22 = vpop.f32.mrb[82].mxu1  ;;  %v1762_v10 = vmax.f32 %v3818_v7, %v1617_v35 }
 0x198   :  { %v1714_v11 = vmax.f32 %v3819_v23, %v2735_v45  ;;  %v1765_v40 = vmax.f32 %v3820_v52, %v2835_v22  ;;  %v1220_v28 = vpop.f32.mrb[83].mxu0  ;;  %v1620_v44 = vpop.f32.mrb[83].mxu1  ;;  %v1913_v38 = vmax.f32 %v1864_v30, 0.0  ;;  %v3831_v30 = vld [vmem:[#allocation40_spill] sm:$0xff] }
 0x199   :  { %2519 = vst [vmem:[%s3746_s3 + $0x68] sm:$0xff] %v2455_v32   ;;  %v2460_v61 = vpack.c.bf16 %v1912_v51, %v1911_v33  ;;  %v1809_v53 = vmax.f32 %v1711_v17, %v1760_v8  ;;  %v1712_v13 = vmax.f32 %v3821_v12, %v1220_v28  ;;  %v1763_v34 = vmax.f32 %v3822_v26, %v1620_v44 }
 0x19a   :  { %v1811_v42 = vmax.f32 %v1713_v43, %v1762_v10  ;;  %v3830_v43 = vld [vmem:[#allocation29_spill] sm:$0xff] }
 0x19b   :  { %2520 = vst [vmem:[%s3746_s3 + $0x70] sm:$0xff] %v2460_v61   ;;  %v1865_v9 = vadd.f32 %v3519_v49, %v1809_v53  ;;  %v1810_v39 = vmax.f32 %v1712_v13, %v1761_v57  ;;  %v1812_v29 = vmax.f32 %v1714_v11, %v1763_v34  ;;  %v3832_v10 = vld [vmem:[#allocation41_spill] sm:$0xff]  ;;  %v3833_v53 = vld [vmem:[#allocation30_spill] sm:$0xff]  ;;  %v3834_v34 = vld [vmem:[#allocation31_spill] sm:$0xff] }
 0x19c   :  { %v1867_v62 = vadd.f32 %v3519_v49, %v1811_v42 }
 0x19d   :  { %v1914_v0 = vmax.f32 %v1865_v9, 0.0  ;;  %v1866_v63 = vadd.f32 %v3519_v49, %v1810_v39  ;;  %v2738_v8 = vpop.f32.mrb[84].mxu0  ;;  %v2838_v2 = vpop.f32.mrb[84].mxu1  ;;  %v1868_v4 = vadd.f32 %v3519_v49, %v1812_v29  ;;  %v3835_v9 = vld [vmem:[#allocation34_spill] sm:$0xff]  ;;  %v3836_v29 = vld [vmem:[#allocation35_spill] sm:$0xff] }
 0x19e   :  { %v1717_v3 = vmax.f32 %v3823_v24, %v2738_v8  ;;  %v1768_v48 = vmax.f32 %v3824_v25, %v2838_v2  ;;  %v1233_v14 = vpop.f32.mrb[85].mxu0  ;;  %v1633_v1 = vpop.f32.mrb[85].mxu1  ;;  %v1916_v18 = vmax.f32 %v1867_v62, 0.0  ;;  %v3837_v2 = vld [vmem:[#allocation36_spill] sm:$0xff] }
 0x19f   :  { %v2465_v15 = vpack.c.bf16 %v1914_v0, %v1913_v38  ;;  %v1915_v19 = vmax.f32 %v1866_v63, 0.0  ;;  %v1715_v57 = vmax.f32 %v3825_v54, %v1233_v14  ;;  %v2739_v27 = vpop.f32.mrb[86].mxu0  ;;  %v2839_v46 = vpop.f32.mrb[86].mxu1  ;;  %v1766_v47 = vmax.f32 %v3826_v5, %v1633_v1 }
 0x1a0   :  { %v1718_v55 = vmax.f32 %v3827_v20, %v2739_v27  ;;  %v1769_v59 = vmax.f32 %v3828_v58, %v2839_v46  ;;  %v1236_v31 = vpop.f32.mrb[87].mxu0  ;;  %v1636_v56 = vpop.f32.mrb[87].mxu1  ;;  %v1917_v6 = vmax.f32 %v1868_v4, 0.0  ;;  %v3839_v4 = vld [vmem:[#allocation48_spill] sm:$0xff] }
 0x1a1   :  { %2521 = vst [vmem:[%s3746_s3 + $0x78] sm:$0xff] %v2465_v15   ;;  %v2470_v36 = vpack.c.bf16 %v1916_v18, %v1915_v19  ;;  %v1813_v21 = vmax.f32 %v1715_v57, %v1764_v60  ;;  %v1716_v41 = vmax.f32 %v3829_v37, %v1236_v31  ;;  %v1767_v50 = vmax.f32 %v3830_v43, %v1636_v56 }
 0x1a2   :  { %v1815_v16 = vmax.f32 %v1717_v3, %v1766_v47  ;;  %v3838_v3 = vld [vmem:[#allocation37_spill] sm:$0xff] }
 0x1a3   :  { %2522 = vst [vmem:[%s3746_s3 + $0x80] sm:$0xff] %v2470_v36   ;;  %v1869_v35 = vadd.f32 %v3519_v49, %v1813_v21  ;;  %v1814_v32 = vmax.f32 %v1716_v41, %v1765_v40  ;;  %v1816_v51 = vmax.f32 %v1718_v55, %v1767_v50  ;;  %v3840_v47 = vld [vmem:[#allocation49_spill] sm:$0xff]  ;;  %v3841_v21 = vld [vmem:[#allocation38_spill] sm:$0xff]  ;;  %v3842_v50 = vld [vmem:[#allocation39_spill] sm:$0xff] }
 0x1a4   :  { %v1871_v33 = vadd.f32 %v3519_v49, %v1815_v16 }
 0x1a5   :  { %v1918_v17 = vmax.f32 %v1869_v35, 0.0  ;;  %v1870_v45 = vadd.f32 %v3519_v49, %v1814_v32  ;;  %v2742_v60 = vpop.f32.mrb[88].mxu0  ;;  %v2842_v22 = vpop.f32.mrb[88].mxu1  ;;  %v1872_v26 = vadd.f32 %v3519_v49, %v1816_v51  ;;  %v3843_v35 = vld [vmem:[#allocation42_spill] sm:$0xff]  ;;  %v3844_v51 = vld [vmem:[#allocation43_spill] sm:$0xff] }
 0x1a6   :  { %v1721_v7 = vmax.f32 %v3831_v30, %v2742_v60  ;;  %v1772_v23 = vmax.f32 %v3832_v10, %v2842_v22  ;;  %v1249_v11 = vpop.f32.mrb[89].mxu0  ;;  %v1649_v52 = vpop.f32.mrb[89].mxu1  ;;  %v1920_v44 = vmax.f32 %v1871_v33, 0.0  ;;  %v3845_v22 = vld [vmem:[#allocation44_spill] sm:$0xff] }
 0x1a7   :  { %v2475_v28 = vpack.c.bf16 %v1918_v17, %v1917_v6  ;;  %v1919_v61 = vmax.f32 %v1870_v45, 0.0  ;;  %v1719_v40 = vmax.f32 %v3833_v53, %v1249_v11  ;;  %v2743_v12 = vpop.f32.mrb[90].mxu0  ;;  %v2843_v13 = vpop.f32.mrb[90].mxu1  ;;  %v1770_v42 = vmax.f32 %v3834_v34, %v1649_v52 }
 0x1a8   :  { %v1722_v39 = vmax.f32 %v3835_v9, %v2743_v12  ;;  %v1773_v62 = vmax.f32 %v3836_v29, %v2843_v13  ;;  %v1252_v38 = vpop.f32.mrb[91].mxu0  ;;  %v1652_v0 = vpop.f32.mrb[91].mxu1  ;;  %v1921_v54 = vmax.f32 %v1872_v26, 0.0  ;;  %v3847_v13 = vld [vmem:[#allocation47_spill] sm:$0xff]  ;;  %v3848_v29 = vld [vmem:[#allocation46_spill] sm:$0xff] }
 0x1a9   :  { %2523 = vst [vmem:[%s3746_s3 + $0x88] sm:$0xff] %v2475_v28   ;;  %v2480_v63 = vpack.c.bf16 %v1920_v44, %v1919_v61  ;;  %v1817_v8 = vmax.f32 %v1719_v40, %v1768_v48  ;;  %v1720_v24 = vmax.f32 %v3837_v2, %v1252_v38  ;;  %v1771_v25 = vmax.f32 %v3838_v3, %v1652_v0 }
 0x1aa   :  { %v1819_v14 = vmax.f32 %v1721_v7, %v1770_v42  ;;  %v3846_v7 = vld [vmem:[#allocation45_spill] sm:$0xff] }
 0x1ab   :  { %2524 = vst [vmem:[%s3746_s3 + $0x90] sm:$0xff] %v2480_v63   ;;  %v1873_v1 = vadd.f32 %v3519_v49, %v1817_v8  ;;  %v1818_v15 = vmax.f32 %v1720_v24, %v1769_v59  ;;  %v1820_v18 = vmax.f32 %v1722_v39, %v1771_v25  ;;  %v3849_v63 = vld [vmem:[#allocation2_spill] sm:$0xff]  ;;  %v3850_v8 = vld [vmem:[#allocation53_spill] sm:$0xff]  ;;  %v3852_v24 = vld [vmem:[#allocation52_spill] sm:$0xff] }
 0x1ac   :  { %v1875_v19 = vadd.f32 %v3519_v49, %v1819_v14 }
 0x1ad   :  { %v1922_v57 = vmax.f32 %v1873_v1, 0.0  ;;  %v1874_v27 = vadd.f32 %v3519_v49, %v1818_v15  ;;  %v2746_v48 = vpop.f32.mrb[92].mxu0  ;;  %v2846_v46 = vpop.f32.mrb[92].mxu1  ;;  %v1876_v43 = vadd.f32 %v3519_v49, %v1820_v18  ;;  %v3853_v18 = vld [vmem:[#allocation51_spill] sm:$0xff] }
 0x1ae   :  { %v1725_v5 = vmax.f32 %v3839_v4, %v2746_v48  ;;  %v1776_v20 = vmax.f32 %v3840_v47, %v2846_v46  ;;  %v1265_v55 = vpop.f32.mrb[93].mxu0  ;;  %v1665_v58 = vpop.f32.mrb[93].mxu1  ;;  %v1924_v56 = vmax.f32 %v1875_v19, 0.0 }
 0x1af   :  { %v2485_v31 = vpack.c.bf16 %v1922_v57, %v1921_v54  ;;  %v1923_v36 = vmax.f32 %v1874_v27, 0.0  ;;  %v1723_v59 = vmax.f32 %v3841_v21, %v1265_v55  ;;  %v2747_v37 = vpop.f32.mrb[94].mxu0  ;;  %v2847_v41 = vpop.f32.mrb[94].mxu1  ;;  %v1774_v16 = vmax.f32 %v3842_v50, %v1665_v58  ;;  %v3854_v57 = vld [vmem:[#allocation3_spill] sm:$0xff]  ;;  %v3855_v27 = vld [vmem:[#allocation50_spill] sm:$0xff] }
 0x1b0   :  { %v1726_v32 = vmax.f32 %v3843_v35, %v2747_v37  ;;  %v1777_v33 = vmax.f32 %v3844_v51, %v2847_v41  ;;  %v1268_v6 = vpop.f32.mrb[95].mxu0  ;;  %v1668_v17 = vpop.f32.mrb[95].mxu1  ;;  %v1925_v53 = vmax.f32 %v1876_v43, 0.0  ;;  %v3856_v48 = vmax.f32 %v3854_v57, %v3855_v27 }
 0x1b1   :  { %2525 = vst [vmem:[%s3746_s3 + $0x98] sm:$0xff] %v2485_v31   ;;  %v2490_v45 = vpack.c.bf16 %v1924_v56, %v1923_v36  ;;  %v1821_v60 = vmax.f32 %v1723_v59, %v1772_v23  ;;  %v1724_v30 = vmax.f32 %v3845_v22, %v1268_v6  ;;  %v1775_v10 = vmax.f32 %v3846_v7, %v1668_v17 }
 0x1b2   :  { %v1823_v11 = vmax.f32 %v1725_v5, %v1774_v16 }
 0x1b3   :  { %2526 = vst [vmem:[%s3746_s3 + $0xa0] sm:$0xff] %v2490_v45   ;;  %v1877_v52 = vadd.f32 %v3519_v49, %v1821_v60  ;;  %v1822_v28 = vmax.f32 %v1724_v30, %v1773_v62  ;;  %v1824_v44 = vmax.f32 %v1726_v32, %v1775_v10  ;;  %v3851_v62 = vmax.f32 %v3849_v63, %v3850_v8 }
 0x1b4   :  { %v1879_v61 = vadd.f32 %v3519_v49, %v1823_v11 }
 0x1b5   :  { %v1926_v40 = vmax.f32 %v1877_v52, 0.0  ;;  %v1878_v12 = vadd.f32 %v3519_v49, %v1822_v28  ;;  %v2750_v23 = vpop.f32.mrb[96].mxu0  ;;  %v1880_v1 = vadd.f32 %v3519_v49, %v1824_v44 }
 0x1b6   :  { %v1729_v26 = vmax.f32 %v2750_v23, %v3847_v13  ;;  %v1281_v34 = vpop.f32.mrb[97].mxu0  ;;  %v1928_v9 = vmax.f32 %v1879_v61, 0.0 }
 0x1b7   :  { %v2495_v42 = vpack.c.bf16 %v1926_v40, %v1925_v53  ;;  %v1927_v39 = vmax.f32 %v1878_v12, 0.0  ;;  %v1727_v38 = vmax.f32 %v3848_v29, %v1281_v34  ;;  %v2751_v0 = vpop.f32.mrb[98].mxu0  ;;  %v1929_v55 = vmax.f32 %v1880_v1, 0.0 }
 0x1b8   :  { %v1778_v2 = vmax.f32 %v3851_v62, %v1729_v26  ;;  %v1730_v3 = vmax.f32 %v2751_v0, %v3852_v24  ;;  %v1284_v25 = vpop.f32.mrb[99].mxu0 }
 0x1b9   :  { %2527 = vst [vmem:[%s3746_s3 + $0xa8] sm:$0xff] %v2495_v42   ;;  %v2500_v14 = vpack.c.bf16 %v1928_v9, %v1927_v39  ;;  %v1825_v15 = vmax.f32 %v1727_v38, %v1776_v20  ;;  %v1728_v19 = vmax.f32 %v3853_v18, %v1284_v25 }
 0x1ba   :  { %v1834_v54 = vadd.f32 %v3519_v49, %v1778_v2  ;;  %v1779_v46 = vmax.f32 %v3856_v48, %v1730_v3 }
 0x1bb   :  { %2528 = vst [vmem:[%s3746_s3 + $0xb0] sm:$0xff] %v2500_v14   ;;  %v1881_v4 = vadd.f32 %v3519_v49, %v1825_v15  ;;  %v1826_v5 = vmax.f32 %v1728_v19, %v1777_v33 }
 0x1bc   :  { %v1835_v47 = vadd.f32 %v3519_v49, %v1779_v46  ;;  %v1883_v31 = vmax.f32 %v1834_v54, 0.0 }
 0x1bd   :  { %v1930_v58 = vmax.f32 %v1881_v4, 0.0  ;;  %v1882_v20 = vadd.f32 %v3519_v49, %v1826_v5 }
 0x1be   :  { %v1884_v56 = vmax.f32 %v1835_v47, 0.0 }
 0x1bf   :  { %v2505_v36 = vpack.c.bf16 %v1930_v58, %v1929_v55  ;;  %v1931_v21 = vmax.f32 %v1882_v20, 0.0 }
 0x1c0   :  { %v2390_v59 = vpack.c.bf16 %v1884_v56, %v1883_v31 }
 0x1c1   :  { %2529 = vst [vmem:[%s3746_s3 + $0xb8] sm:$0xff] %v2505_v36   ;;  %v2386_v37 = vpack.c.bf16 %v1931_v21, %v1931_v21 }
 0x1c2   :  { %2391 = vst [vmem:[%s3746_s3] sm:$0xff] %v2390_v59  }
 0x1c3   :  { %2177 = vst [vmem:[%s3746_s3 + $0xc0] sm:$0xf] %v2386_v37 }

// kernel: net_forward.4
= control target key start
LH: loop header
LB: loop body
LE: loop exit
PB: predicated region body
PF: predicated region fallthrough
CT: control target
= control target key end

     0   :  { %s988_s1 = inlined_call_operand.vmem [shape: bf16[256,128], index: 1, kind: input, shape index: {}]   ;;  %s989_s0 = inlined_call_operand.vmem [shape: bf16[4,56,256], index: 0, kind: input, shape index: {}]   ;;  %s990_s2 = inlined_call_operand.vmem [shape: f32[1,128], index: 2, kind: input, shape index: {}]   ;;  %s991_s3 = inlined_call_operand.vmem [shape: bf16[56,128], index: 3, kind: output, shape index: {}]  }
   0x1   :  { %v730_v0 = vld [vmem:[%s988_s1 + $0x40] sm:$0xff]   ;;  %v732_v2 = vld [vmem:[%s988_s1 + $0x48] sm:$0xff]   ;;  %v734_v4 = vld [vmem:[%s988_s1 + $0x50] sm:$0xff]  }
   0x2   :  { %v731_v1 = vld [vmem:[%s988_s1] sm:$0xff]   ;;  %614 = vmatprep.subr.bf16.mxu0 %v730_v0  ;;  %714 = vmatprep.subr.bf16.mxu1 %v730_v0  ;;  %v733_v3 = vld [vmem:[%s988_s1 + $0x8] sm:$0xff]   ;;  %v735_v5 = vld [vmem:[%s988_s1 + $0x10] sm:$0xff]  }
   0x3   :  { %615 = vmatpush3.bf16.msra.mxu0 %v731_v1  ;;  %722 = vmatpush3.bf16.msra.mxu1 %v731_v1  ;;  %v736_v6 = vld [vmem:[%s988_s1 + $0x58] sm:$0xff]   ;;  %v738_v8 = vld [vmem:[%s988_s1 + $0x60] sm:$0xff]   ;;  %v740_v10 = vld [vmem:[%s988_s1 + $0x68] sm:$0xff]  }
   0x4   :  { %616 = vmatprep.subr.bf16.mxu0 %v732_v2  ;;  %715 = vmatprep.subr.bf16.mxu1 %v732_v2  ;;  %v737_v7 = vld [vmem:[%s988_s1 + $0x18] sm:$0xff]   ;;  %v739_v9 = vld [vmem:[%s988_s1 + $0x20] sm:$0xff]   ;;  %v741_v13 = vld [vmem:[%s988_s1 + $0x28] sm:$0xff]  }
   0x5   :  { %v748_v11 = vld [vmem:[%s989_s0 + $0x4] ss:$8 sps:$4 sm:$0xff]   ;;  %v751_v12 = vld [vmem:[%s989_s0 + $0x74] ss:$8 sps:$4 sm:$0xff]   ;;  %v746_v18 = vld [vmem:[%s989_s0] ss:$8 sps:$4 sm:$0xff]  }
   0x6   :  { %v742_v14 = vld [vmem:[%s988_s1 + $0x70] sm:$0xff]   ;;  %343 = vmatprep.mubr.bf16.mxu0 %v748_v11  ;;  %399 = vmatprep.mubr.bf16.mxu1 %v751_v12  ;;  %v744_v16 = vld [vmem:[%s988_s1 + $0x78] sm:$0xff]   ;;  %v754_v21 = vld [vmem:[%s989_s0 + $0x84] ss:$8 sps:$4 sm:$0xff]  }
   0x7   :  { %617 = vmatpush3.bf16.msra.mxu0 %v733_v3  ;;  %723 = vmatpush3.bf16.msra.mxu1 %v733_v3  ;;  %v743_v15 = vld [vmem:[%s988_s1 + $0x30] sm:$0xff]   ;;  %v745_v17 = vld [vmem:[%s988_s1 + $0x38] sm:$0xff]   ;;  %v757_v23 = vld [vmem:[%s989_s0 + $0x80] ss:$8 sps:$4 sm:$0xff]  }
   0x8   :  { %618 = vmatprep.subr.bf16.mxu0 %v734_v4  ;;  %716 = vmatprep.subr.bf16.mxu1 %v734_v4  ;;  %v749_v19 = vld [vmem:[%s989_s0 + $0x70] ss:$8 sps:$4 sm:$0xff]   ;;  %v752_v20 = vld [vmem:[%s989_s0 + $0x14] ss:$8 sps:$4 sm:$0xff]   ;;  %v758_v24 = vld [vmem:[%s989_s0 + $0x24] ss:$8 sps:$4 sm:$0xff]  }
   0x9   :  { %v756_v22 = vld [vmem:[%s989_s0 + $0x10] ss:$8 sps:$4 sm:$0xff]   ;;  %v760_v25 = vld [vmem:[%s989_s0 + $0x94] ss:$8 sps:$4 sm:$0xff]   ;;  %v762_v26 = vld [vmem:[%s989_s0 + $0x20] ss:$8 sps:$4 sm:$0xff]  }
   0xa   :  { %v763_v27 = vld [vmem:[%s989_s0 + $0x90] ss:$8 sps:$4 sm:$0xff]   ;;  %v764_v28 = vld [vmem:[%s989_s0 + $0x34] ss:$8 sps:$4 sm:$0xff]   ;;  %v766_v29 = vld [vmem:[%s989_s0 + $0xa4] ss:$8 sps:$4 sm:$0xff]  }
   0xb   :  { %619 = vmatpush3.bf16.msra.mxu0 %v735_v5  ;;  %724 = vmatpush3.bf16.msra.mxu1 %v735_v5  ;;  %v768_v30 = vld [vmem:[%s989_s0 + $0x30] ss:$8 sps:$4 sm:$0xff]   ;;  %v769_v31 = vld [vmem:[%s989_s0 + $0xa0] ss:$8 sps:$4 sm:$0xff]   ;;  %v770_v32 = vld [vmem:[%s989_s0 + $0x44] ss:$8 sps:$4 sm:$0xff]  }
   0xc   :  { %620 = vmatprep.subr.bf16.mxu0 %v736_v6  ;;  %717 = vmatprep.subr.bf16.mxu1 %v736_v6  ;;  %v772_v33 = vld [vmem:[%s989_s0 + $0xb4] ss:$8 sps:$4 sm:$0xff]   ;;  %v774_v34 = vld [vmem:[%s989_s0 + $0x40] ss:$8 sps:$4 sm:$0xff]   ;;  %v775_v35 = vld [vmem:[%s989_s0 + $0xb0] ss:$8 sps:$4 sm:$0xff]  }
   0xd   :  { %v776_v36 = vld [vmem:[%s989_s0 + $0x54] ss:$8 sps:$4 sm:$0xff]   ;;  %v778_v37 = vld [vmem:[%s989_s0 + $0xc4] ss:$8 sps:$4 sm:$0xff]   ;;  %v780_v38 = vld [vmem:[%s989_s0 + $0x50] ss:$8 sps:$4 sm:$0xff]  }
   0xe   :  { %v781_v39 = vld [vmem:[%s989_s0 + $0xc0] ss:$8 sps:$4 sm:$0xff]   ;;  %v782_v40 = vld [vmem:[%s989_s0 + $0x64] ss:$8 sps:$4 sm:$0xff]   ;;  %v784_v41 = vld [vmem:[%s989_s0 + $0xd4] ss:$8 sps:$4 sm:$0xff]  }
   0xf   :  { %621 = vmatpush3.bf16.msra.mxu0 %v737_v7  ;;  %725 = vmatpush3.bf16.msra.mxu1 %v737_v7  ;;  %v786_v42 = vld [vmem:[%s989_s0 + $0x60] ss:$8 sps:$4 sm:$0xff]   ;;  %v787_v43 = vld [vmem:[%s989_s0 + $0xd0] ss:$8 sps:$4 sm:$0xff]  }
  0x10   :  { %622 = vmatprep.subr.bf16.mxu0 %v738_v8  ;;  %718 = vmatprep.subr.bf16.mxu1 %v738_v8 }
  0x13   :  { %623 = vmatpush3.bf16.msra.mxu0 %v739_v9  ;;  %726 = vmatpush3.bf16.msra.mxu1 %v739_v9 }
  0x14   :  { %624 = vmatprep.subr.bf16.mxu0 %v740_v10  ;;  %719 = vmatprep.subr.bf16.mxu1 %v740_v10 }
  0x17   :  { %625 = vmatpush3.bf16.msra.mxu0 %v741_v13  ;;  %727 = vmatpush3.bf16.msra.mxu1 %v741_v13 }
  0x18   :  { %626 = vmatprep.subr.bf16.mxu0 %v742_v14  ;;  %720 = vmatprep.subr.bf16.mxu1 %v742_v14 }
  0x1b   :  { %627 = vmatpush3.bf16.msra.mxu0 %v743_v15  ;;  %728 = vmatpush3.bf16.msra.mxu1 %v743_v15 }
  0x1c   :  { %628 = vmatprep.subr.bf16.mxu0 %v744_v16  ;;  %721 = vmatprep.subr.bf16.mxu1 %v744_v16 }
  0x1f   :  { %629 = vmatpush3.bf16.msra.mxu0 %v745_v17  ;;  %729 = vmatpush3.bf16.msra.mxu1 %v745_v17 }
  0x22   :  { %344 = vmatmul.mubr.bf16.vlgmr.msra.gmra.mrb[0].mxu0 %v746_v18  ;;  %400 = vmatmul.mubr.bf16.vlgmr.msra.gmra.mrb[0].mxu1 %v749_v19 }
  0x23   :  { %351 = vmatprep.mubr.bf16.mxu0 %v752_v20  ;;  %407 = vmatprep.mubr.bf16.mxu1 %v754_v21 }
  0x2a   :  { %352 = vmatmul.mubr.bf16.gmra.mrb[4].mxu0 %v756_v22  ;;  %408 = vmatmul.mubr.bf16.gmra.mrb[4].mxu1 %v757_v23 }
  0x2b   :  { %359 = vmatprep.mubr.bf16.mxu0 %v758_v24  ;;  %415 = vmatprep.mubr.bf16.mxu1 %v760_v25 }
  0x32   :  { %360 = vmatmul.mubr.bf16.gmra.mrb[8].mxu0 %v762_v26  ;;  %416 = vmatmul.mubr.bf16.gmra.mrb[8].mxu1 %v763_v27 }
  0x33   :  { %367 = vmatprep.mubr.bf16.mxu0 %v764_v28  ;;  %423 = vmatprep.mubr.bf16.mxu1 %v766_v29 }
  0x3a   :  { %368 = vmatmul.mubr.bf16.gmra.mrb[12].mxu0 %v768_v30  ;;  %424 = vmatmul.mubr.bf16.gmra.mrb[12].mxu1 %v769_v31 }
  0x3b   :  { %375 = vmatprep.mubr.bf16.mxu0 %v770_v32  ;;  %431 = vmatprep.mubr.bf16.mxu1 %v772_v33 }
  0x42   :  { %376 = vmatmul.mubr.bf16.gmra.mrb[16].mxu0 %v774_v34  ;;  %432 = vmatmul.mubr.bf16.gmra.mrb[16].mxu1 %v775_v35 }
  0x43   :  { %383 = vmatprep.mubr.bf16.mxu0 %v776_v36  ;;  %439 = vmatprep.mubr.bf16.mxu1 %v778_v37 }
  0x4a   :  { %384 = vmatmul.mubr.bf16.gmra.mrb[20].mxu0 %v780_v38  ;;  %440 = vmatmul.mubr.bf16.gmra.mrb[20].mxu1 %v781_v39  ;;  %v959_v39 = vld [vmem:[%s990_s2] ss:$0 sm:$0xff] }
  0x4b   :  { %391 = vmatprep.mubr.bf16.mxu0 %v782_v40  ;;  %447 = vmatprep.mubr.bf16.mxu1 %v784_v41 }
  0x52   :  { %392 = vmatmul.mubr.bf16.gmra.mrb[24].mxu0 %v786_v42  ;;  %448 = vmatmul.mubr.bf16.gmra.mrb[24].mxu1 %v787_v43 }
  0xf5   :  { %v630_v44 = vpop.f32.mrb[0].mxu0  ;;  %v672_v45 = vpop.f32.mrb[0].mxu1 }
  0xf6   :  { %v631_v46 = vpop.f32.mrb[1].mxu0  ;;  %v673_v47 = vpop.f32.mrb[1].mxu1 }
  0xf7   :  { %v632_v48 = vadd.f32 %v631_v46, %v630_v44  ;;  %v674_v49 = vadd.f32 %v673_v47, %v672_v45  ;;  %v633_v50 = vpop.f32.mrb[2].mxu0  ;;  %v675_v51 = vpop.f32.mrb[2].mxu1 }
  0xf8   :  { %v634_v52 = vpop.f32.mrb[3].mxu0  ;;  %v676_v53 = vpop.f32.mrb[3].mxu1 }
  0xf9   :  { %v635_v54 = vadd.f32 %v634_v52, %v633_v50  ;;  %v677_v55 = vadd.f32 %v676_v53, %v675_v51 }
  0xfd   :  { %v636_v56 = vpop.f32.mrb[4].mxu0  ;;  %v678_v57 = vpop.f32.mrb[4].mxu1 }
  0xfe   :  { %v637_v58 = vpop.f32.mrb[5].mxu0  ;;  %v679_v59 = vpop.f32.mrb[5].mxu1 }
  0xff   :  { %v638_v60 = vadd.f32 %v637_v58, %v636_v56  ;;  %v680_v61 = vadd.f32 %v679_v59, %v678_v57  ;;  %v639_v62 = vpop.f32.mrb[6].mxu0  ;;  %v681_v63 = vpop.f32.mrb[6].mxu1 }
 0x100   :  { %v640_v0 = vpop.f32.mrb[7].mxu0  ;;  %v682_v1 = vpop.f32.mrb[7].mxu1 }
 0x101   :  { %v940_v2 = vadd.f32 %v640_v0, %v639_v62  ;;  %v942_v3 = vadd.f32 %v682_v1, %v681_v63 }
 0x105   :  { %v642_v4 = vpop.f32.mrb[8].mxu0  ;;  %v684_v5 = vpop.f32.mrb[8].mxu1 }
 0x106   :  { %v643_v6 = vpop.f32.mrb[9].mxu0  ;;  %v685_v7 = vpop.f32.mrb[9].mxu1 }
 0x107   :  { %v944_v8 = vadd.f32 %v643_v6, %v642_v4  ;;  %v946_v9 = vadd.f32 %v685_v7, %v684_v5  ;;  %v645_v10 = vpop.f32.mrb[10].mxu0  ;;  %v687_v11 = vpop.f32.mrb[10].mxu1 }
 0x108   :  { %v646_v12 = vpop.f32.mrb[11].mxu0  ;;  %v688_v13 = vpop.f32.mrb[11].mxu1 }
 0x109   :  { %v948_v14 = vadd.f32 %v646_v12, %v645_v10  ;;  %v950_v15 = vadd.f32 %v688_v13, %v687_v11 }
 0x10d   :  { %v648_v16 = vpop.f32.mrb[12].mxu0  ;;  %v690_v17 = vpop.f32.mrb[12].mxu1 }
 0x10e   :  { %v649_v18 = vpop.f32.mrb[13].mxu0  ;;  %v691_v19 = vpop.f32.mrb[13].mxu1 }
 0x10f   :  { %v952_v20 = vadd.f32 %v649_v18, %v648_v16  ;;  %v954_v21 = vadd.f32 %v691_v19, %v690_v17  ;;  %v651_v22 = vpop.f32.mrb[14].mxu0  ;;  %v693_v23 = vpop.f32.mrb[14].mxu1 }
 0x110   :  { %v652_v24 = vpop.f32.mrb[15].mxu0  ;;  %v694_v25 = vpop.f32.mrb[15].mxu1 }
 0x111   :  { %v653_v26 = vadd.f32 %v652_v24, %v651_v22  ;;  %v695_v27 = vadd.f32 %v694_v25, %v693_v23 }
 0x113   :  { %v456_v28 = vmax.f32 %v632_v48, %v653_v26  ;;  %v463_v29 = vmax.f32 %v674_v49, %v695_v27 }
 0x115   :  { %v470_v30 = vmax.f32 %v456_v28, %v463_v29  ;;  %v654_v31 = vpop.f32.mrb[16].mxu0  ;;  %v696_v32 = vpop.f32.mrb[16].mxu1 }
 0x116   :  { %v655_v33 = vpop.f32.mrb[17].mxu0  ;;  %v697_v34 = vpop.f32.mrb[17].mxu1 }
 0x117   :  { %v656_v35 = vadd.f32 %v655_v33, %v654_v31  ;;  %v698_v36 = vadd.f32 %v697_v34, %v696_v32  ;;  %v657_v37 = vpop.f32.mrb[18].mxu0  ;;  %v699_v38 = vpop.f32.mrb[18].mxu1  ;;  %v484_v46 = vadd.f32 %v959_v39, %v470_v30 }
 0x118   :  { %v658_v40 = vpop.f32.mrb[19].mxu0  ;;  %v700_v41 = vpop.f32.mrb[19].mxu1 }
 0x119   :  { %v457_v42 = vmax.f32 %v635_v54, %v656_v35  ;;  %v464_v43 = vmax.f32 %v677_v55, %v698_v36  ;;  %v659_v44 = vadd.f32 %v658_v40, %v657_v37  ;;  %v701_v45 = vadd.f32 %v700_v41, %v699_v38 }
 0x11a   :  { %v491_v58 = vmax.f32 %v484_v46, 0.0 }
 0x11b   :  { %v471_v47 = vmax.f32 %v457_v42, %v464_v43  ;;  %v458_v48 = vmax.f32 %v638_v60, %v659_v44  ;;  %v465_v49 = vmax.f32 %v680_v61, %v701_v45 }
 0x11d   :  { %v485_v50 = vadd.f32 %v959_v39, %v471_v47  ;;  %v660_v51 = vpop.f32.mrb[20].mxu0  ;;  %v702_v52 = vpop.f32.mrb[20].mxu1  ;;  %v472_v53 = vmax.f32 %v458_v48, %v465_v49 }
 0x11e   :  { %v661_v56 = vpop.f32.mrb[21].mxu0  ;;  %v703_v57 = vpop.f32.mrb[21].mxu1 }
 0x11f   :  { %v492_v59 = vmax.f32 %v485_v50, 0.0  ;;  %v662_v62 = vadd.f32 %v661_v56, %v660_v51  ;;  %v704_v63 = vadd.f32 %v703_v57, %v702_v52  ;;  %v663_v54 = vpop.f32.mrb[22].mxu0  ;;  %v705_v55 = vpop.f32.mrb[22].mxu1  ;;  %v486_v7 = vadd.f32 %v959_v39, %v472_v53 }
 0x120   :  { %v664_v0 = vpop.f32.mrb[23].mxu0  ;;  %v706_v1 = vpop.f32.mrb[23].mxu1 }
 0x121   :  { %v600_v4 = vpack.c.bf16 %v492_v59, %v491_v58  ;;  %v459_v5 = vmax.f32 %v940_v2, %v662_v62  ;;  %v466_v60 = vmax.f32 %v942_v3, %v704_v63  ;;  %v665_v61 = vadd.f32 %v664_v0, %v663_v54 }
 0x122   :  { %v707_v6 = vadd.f32 %v706_v1, %v705_v55  ;;  %v493_v19 = vmax.f32 %v486_v7, 0.0 }
 0x123   :  { %601 = vst [vmem:[%s991_s3] sm:$0xff] %v600_v4   ;;  %v473_v10 = vmax.f32 %v459_v5, %v466_v60  ;;  %v460_v11 = vmax.f32 %v944_v8, %v665_v61 }
 0x124   :  { %v467_v12 = vmax.f32 %v946_v9, %v707_v6 }
 0x125   :  { %v487_v13 = vadd.f32 %v959_v39, %v473_v10  ;;  %v666_v16 = vpop.f32.mrb[24].mxu0  ;;  %v708_v17 = vpop.f32.mrb[24].mxu1 }
 0x126   :  { %v474_v2 = vmax.f32 %v460_v11, %v467_v12  ;;  %v667_v18 = vpop.f32.mrb[25].mxu0  ;;  %v709_v3 = vpop.f32.mrb[25].mxu1 }
 0x127   :  { %v494_v22 = vmax.f32 %v487_v13, 0.0  ;;  %v668_v23 = vadd.f32 %v667_v18, %v666_v16  ;;  %v710_v24 = vadd.f32 %v709_v3, %v708_v17  ;;  %v669_v25 = vpop.f32.mrb[26].mxu0  ;;  %v711_v26 = vpop.f32.mrb[26].mxu1 }
 0x128   :  { %v670_v27 = vpop.f32.mrb[27].mxu0  ;;  %v712_v28 = vpop.f32.mrb[27].mxu1  ;;  %v488_v32 = vadd.f32 %v959_v39, %v474_v2 }
 0x129   :  { %v605_v29 = vpack.c.bf16 %v494_v22, %v493_v19  ;;  %v461_v8 = vmax.f32 %v948_v14, %v668_v23  ;;  %v468_v9 = vmax.f32 %v950_v15, %v710_v24  ;;  %v671_v30 = vadd.f32 %v670_v27, %v669_v25 }
 0x12a   :  { %v713_v31 = vadd.f32 %v712_v28, %v711_v26  ;;  %v495_v38 = vmax.f32 %v488_v32, 0.0 }
 0x12b   :  { %612 = vst [vmem:[%s991_s3 + $0x8] sm:$0xff] %v605_v29   ;;  %v475_v33 = vmax.f32 %v461_v8, %v468_v9  ;;  %v462_v34 = vmax.f32 %v952_v20, %v671_v30 }
 0x12c   :  { %v469_v35 = vmax.f32 %v954_v21, %v713_v31 }
 0x12d   :  { %v489_v36 = vadd.f32 %v959_v39, %v475_v33 }
 0x12e   :  { %v476_v37 = vmax.f32 %v462_v34, %v469_v35 }
 0x12f   :  { %v496_v14 = vmax.f32 %v489_v36, 0.0 }
 0x130   :  { %v490_v15 = vadd.f32 %v959_v39, %v476_v37 }
 0x131   :  { %v610_v40 = vpack.c.bf16 %v496_v14, %v495_v38 }
 0x132   :  { %v497_v41 = vmax.f32 %v490_v15, 0.0 }
 0x133   :  { %613 = vst [vmem:[%s991_s3 + $0x10] sm:$0xff] %v610_v40  }
 0x134   :  { %v596_v42 = vpack.c.bf16 %v497_v41, %v497_v41 }
 0x136   :  { %533 = vst [vmem:[%s991_s3 + $0x18] sm:$0xf] %v596_v42 }

// kernel: net_forward.5
= control target key start
LH: loop header
LB: loop body
LE: loop exit
PB: predicated region body
PF: predicated region fallthrough
CT: control target
= control target key end

     0   :  { %v828_v39 = vmov 0.0   ;;  %vm829_vm0 = vmmov 0   ;;  %s1050_s1 = inlined_call_operand.vmem [shape: bf16[512,128], index: 1, kind: input, shape index: {}]   ;;  %s1051_s0 = inlined_call_operand.vmem [shape: bf16[8,512], index: 0, kind: input, shape index: {}]   ;;  %s1052_s3 = inlined_call_operand.vmem [shape: bf16[128,128], index: 3, kind: input, shape index: {}]   ;;  %s1053_s5 = inlined_call_operand.vmem [shape: bf16[128,128], index: 5, kind: input, shape index: {}]   ;;  %s1054_s2 = inlined_call_operand.vmem [shape: f32[1,128], index: 2, kind: input, shape index: {}]   ;;  %s1055_s4 = inlined_call_operand.vmem [shape: f32[1,128], index: 4, kind: input, shape index: {}]   ;;  %s1056_s6 = inlined_call_operand.vmem [shape: f32[1,128], index: 6, kind: input, shape index: {}]   ;;  %s1057_s7 = inlined_call_operand.vmem [shape: f32[8,128], index: 7, kind: output, shape index: {}]  }
   0x1   :  { %v776_v0 = vld [vmem:[%s1050_s1 + $0x40] sm:$0xff]   ;;  %v780_v4 = vld [vmem:[%s1050_s1 + $0x48] sm:$0xff]   ;;  %v784_v8 = vld [vmem:[%s1050_s1 + $0x50] sm:$0xff]  }
   0x2   :  { %v777_v1 = vld [vmem:[%s1050_s1 + $0xc0] sm:$0xff]   ;;  %672 = vmatprep.subr.bf16.mxu0 %v776_v0  ;;  %v781_v5 = vld [vmem:[%s1050_s1 + $0xc8] sm:$0xff]   ;;  %v785_v9 = vld [vmem:[%s1050_s1 + $0xd0] sm:$0xff]  }
   0x3   :  { %v778_v2 = vld [vmem:[%s1050_s1] sm:$0xff]   ;;  %694 = vmatprep.subr.bf16.mxu1 %v777_v1  ;;  %v782_v6 = vld [vmem:[%s1050_s1 + $0x8] sm:$0xff]   ;;  %v786_v10 = vld [vmem:[%s1050_s1 + $0x10] sm:$0xff]  }
   0x4   :  { %v779_v3 = vld [vmem:[%s1050_s1 + $0x80] sm:$0xff]   ;;  %673 = vmatpush3.bf16.msra.mxu0 %v778_v2  ;;  %v783_v7 = vld [vmem:[%s1050_s1 + $0x88] sm:$0xff]   ;;  %v787_v11 = vld [vmem:[%s1050_s1 + $0x90] sm:$0xff]  }
   0x5   :  { %695 = vmatpush3.bf16.msra.mxu1 %v779_v3  ;;  %674 = vmatprep.subr.bf16.mxu0 %v780_v4  ;;  %v788_v12 = vld [vmem:[%s1050_s1 + $0x58] sm:$0xff]   ;;  %v792_v16 = vld [vmem:[%s1050_s1 + $0x60] sm:$0xff]   ;;  %v796_v20 = vld [vmem:[%s1050_s1 + $0x68] sm:$0xff]  }
   0x6   :  { %696 = vmatprep.subr.bf16.mxu1 %v781_v5  ;;  %v789_v13 = vld [vmem:[%s1050_s1 + $0xd8] sm:$0xff]   ;;  %v793_v17 = vld [vmem:[%s1050_s1 + $0xe0] sm:$0xff]   ;;  %v797_v21 = vld [vmem:[%s1050_s1 + $0xe8] sm:$0xff]  }
   0x7   :  { %v790_v14 = vld [vmem:[%s1050_s1 + $0x18] sm:$0xff]   ;;  %v794_v18 = vld [vmem:[%s1050_s1 + $0x20] sm:$0xff]   ;;  %v798_v22 = vld [vmem:[%s1050_s1 + $0x28] sm:$0xff]  }
   0x8   :  { %675 = vmatpush3.bf16.msra.mxu0 %v782_v6  ;;  %v791_v15 = vld [vmem:[%s1050_s1 + $0x98] sm:$0xff]   ;;  %v795_v19 = vld [vmem:[%s1050_s1 + $0xa0] sm:$0xff]   ;;  %v799_v23 = vld [vmem:[%s1050_s1 + $0xa8] sm:$0xff]  }
   0x9   :  { %697 = vmatpush3.bf16.msra.mxu1 %v783_v7  ;;  %676 = vmatprep.subr.bf16.mxu0 %v784_v8  ;;  %v800_v24 = vld [vmem:[%s1050_s1 + $0x70] sm:$0xff]   ;;  %v804_v28 = vld [vmem:[%s1050_s1 + $0x78] sm:$0xff]   ;;  %v27_v32 = vld [vmem:[%s1051_s0] sm:$0xff] }
   0xa   :  { %698 = vmatprep.subr.bf16.mxu1 %v785_v9  ;;  %v801_v25 = vld [vmem:[%s1050_s1 + $0xf0] sm:$0xff]   ;;  %v805_v29 = vld [vmem:[%s1050_s1 + $0xf8] sm:$0xff]   ;;  %v28_v33 = vld [vmem:[%s1051_s0 + $0x8] sm:$0xff]  ;;  %v618_v34 = vcombine.low %v27_v32, %v27_v32  ;;  %v619_v35 = vcombine.high %v27_v32, %v27_v32 }
   0xb   :  { %v802_v26 = vld [vmem:[%s1050_s1 + $0x30] sm:$0xff]   ;;  %v806_v30 = vld [vmem:[%s1050_s1 + $0x38] sm:$0xff]   ;;  %v620_v36 = vcombine.low %v28_v33, %v28_v33  ;;  %v621_v37 = vcombine.high %v28_v33, %v28_v33  ;;  %v812_v38 = vld [vmem:[%s1052_s3] sm:$0xff]  }
   0xc   :  { %677 = vmatpush3.bf16.msra.mxu0 %v786_v10  ;;  %v803_v27 = vld [vmem:[%s1050_s1 + $0xb0] sm:$0xff]   ;;  %v807_v31 = vld [vmem:[%s1050_s1 + $0xb8] sm:$0xff]   ;;  %338 = vmatprep.mubr.bf16.mxu0 %v619_v35  ;;  %v813_v40 = vld [vmem:[%s1052_s3 + $0x8] sm:$0xff]  }
   0xd   :  { %699 = vmatpush3.bf16.msra.mxu1 %v787_v11  ;;  %678 = vmatprep.subr.bf16.mxu0 %v788_v12  ;;  %v814_v41 = vld [vmem:[%s1052_s3 + $0x10] sm:$0xff]   ;;  %v815_v42 = vld [vmem:[%s1052_s3 + $0x18] sm:$0xff]   ;;  %v816_v43 = vld [vmem:[%s1052_s3 + $0x20] sm:$0xff]  }
   0xe   :  { %700 = vmatprep.subr.bf16.mxu1 %v789_v13  ;;  %378 = vmatprep.mubr.bf16.mxu1 %v621_v37  ;;  %v817_v44 = vld [vmem:[%s1052_s3 + $0x28] sm:$0xff]   ;;  %v818_v45 = vld [vmem:[%s1052_s3 + $0x30] sm:$0xff]   ;;  %v819_v46 = vld [vmem:[%s1052_s3 + $0x38] sm:$0xff]  }
   0xf   :  { %v820_v47 = vld [vmem:[%s1053_s5] sm:$0xff]   ;;  %v821_v48 = vld [vmem:[%s1053_s5 + $0x8] sm:$0xff]   ;;  %v822_v49 = vld [vmem:[%s1053_s5 + $0x10] sm:$0xff]  }
  0x10   :  { %679 = vmatpush3.bf16.msra.mxu0 %v790_v14  ;;  %v823_v50 = vld [vmem:[%s1053_s5 + $0x18] sm:$0xff]   ;;  %v824_v51 = vld [vmem:[%s1053_s5 + $0x20] sm:$0xff]   ;;  %v825_v52 = vld [vmem:[%s1053_s5 + $0x28] sm:$0xff]  }
  0x11   :  { %701 = vmatpush3.bf16.msra.mxu1 %v791_v15  ;;  %680 = vmatprep.subr.bf16.mxu0 %v792_v16  ;;  %v617_v55 = vld [vmem:[%s1054_s2] ss:$0 sm:$0xff]  ;;  %v826_v4 = vld [vmem:[%s1053_s5 + $0x30] sm:$0xff]   ;;  %v827_v5 = vld [vmem:[%s1053_s5 + $0x38] sm:$0xff]  }
  0x12   :  { %702 = vmatprep.subr.bf16.mxu1 %v793_v17  ;;  %v654_v6 = vld [vmem:[%s1055_s4] ss:$0 sm:$0xff] }
  0x13   :  { %v663_v14 = vld [vmem:[%s1056_s6] ss:$0 sm:$0xff] }
  0x14   :  { %681 = vmatpush3.bf16.msra.mxu0 %v794_v18 }
  0x15   :  { %703 = vmatpush3.bf16.msra.mxu1 %v795_v19  ;;  %682 = vmatprep.subr.bf16.mxu0 %v796_v20 }
  0x16   :  { %704 = vmatprep.subr.bf16.mxu1 %v797_v21 }
  0x18   :  { %683 = vmatpush3.bf16.msra.mxu0 %v798_v22 }
  0x19   :  { %705 = vmatpush3.bf16.msra.mxu1 %v799_v23  ;;  %684 = vmatprep.subr.bf16.mxu0 %v800_v24 }
  0x1a   :  { %706 = vmatprep.subr.bf16.mxu1 %v801_v25 }
  0x1c   :  { %685 = vmatpush3.bf16.msra.mxu0 %v802_v26 }
  0x1d   :  { %707 = vmatpush3.bf16.msra.mxu1 %v803_v27  ;;  %686 = vmatprep.subr.bf16.mxu0 %v804_v28 }
  0x1e   :  { %708 = vmatprep.subr.bf16.mxu1 %v805_v29 }
  0x20   :  { %687 = vmatpush3.bf16.msra.mxu0 %v806_v30 }
  0x21   :  { %709 = vmatpush3.bf16.msra.mxu1 %v807_v31  ;;  %734 = vmatprep.subr.bf16.mxu0 %v828_v39 }
  0x22   :  { %754 = vmatprep.subr.bf16.mxu1 %v828_v39 }
  0x23   :  { %339 = vmatmul.mubr.bf16.vlgmr.msra.gmra.mrb[0].mxu0 %v618_v34 }
  0x24   :  { %379 = vmatmul.mubr.bf16.vlgmr.msra.gmra.mrb[0].mxu1 %v620_v36  ;;  %735 = vmatpush3.bf16.msra.mxu0 %v812_v38 }
  0x25   :  { %736 = vmatprep.subr.bf16.mxu0 %v828_v39  ;;  %750 = vmatprep.mubr.msk.bf16.mxu0 %vm829_vm0, %v828_v39 }
  0x26   :  { %770 = vmatprep.mubr.msk.bf16.mxu1 %vm829_vm0, %v828_v39  ;;  %755 = vmatpush3.bf16.msra.mxu1 %v820_v47 }
  0x27   :  { %756 = vmatprep.subr.bf16.mxu1 %v828_v39 }
  0x28   :  { %737 = vmatpush3.bf16.msra.mxu0 %v813_v40 }
  0x29   :  { %738 = vmatprep.subr.bf16.mxu0 %v828_v39 }
  0x2a   :  { %757 = vmatpush3.bf16.msra.mxu1 %v821_v48 }
  0x2b   :  { %758 = vmatprep.subr.bf16.mxu1 %v828_v39 }
  0x2c   :  { %739 = vmatpush3.bf16.msra.mxu0 %v814_v41 }
  0x2d   :  { %740 = vmatprep.subr.bf16.mxu0 %v828_v39 }
  0x2e   :  { %759 = vmatpush3.bf16.msra.mxu1 %v822_v49 }
  0x2f   :  { %760 = vmatprep.subr.bf16.mxu1 %v828_v39 }
  0x30   :  { %741 = vmatpush3.bf16.msra.mxu0 %v815_v42 }
  0x31   :  { %742 = vmatprep.subr.bf16.mxu0 %v828_v39 }
  0x32   :  { %761 = vmatpush3.bf16.msra.mxu1 %v823_v50 }
  0x33   :  { %762 = vmatprep.subr.bf16.mxu1 %v828_v39 }
  0x34   :  { %743 = vmatpush3.bf16.msra.mxu0 %v816_v43 }
  0x35   :  { %744 = vmatprep.subr.bf16.mxu0 %v828_v39 }
  0x36   :  { %763 = vmatpush3.bf16.msra.mxu1 %v824_v51 }
  0x37   :  { %764 = vmatprep.subr.bf16.mxu1 %v828_v39 }
  0x38   :  { %745 = vmatpush3.bf16.msra.mxu0 %v817_v44 }
  0x39   :  { %746 = vmatprep.subr.bf16.mxu0 %v828_v39 }
  0x3a   :  { %765 = vmatpush3.bf16.msra.mxu1 %v825_v52 }
  0x3b   :  { %766 = vmatprep.subr.bf16.mxu1 %v828_v39 }
  0x3c   :  { %747 = vmatpush3.bf16.msra.mxu0 %v818_v45 }
  0x3d   :  { %748 = vmatprep.subr.bf16.mxu0 %v828_v39 }
  0x3e   :  { %767 = vmatpush3.bf16.msra.mxu1 %v826_v4 }
  0x3f   :  { %768 = vmatprep.subr.bf16.mxu1 %v828_v39 }
  0x40   :  { %749 = vmatpush3.bf16.msra.mxu0 %v819_v46 }
  0x42   :  { %769 = vmatpush3.bf16.msra.mxu1 %v827_v5 }
  0xf6   :  { %v688_v53 = vpop.f32.mrb[0].mxu0 }
  0xf7   :  { %v710_v54 = vpop.f32.mrb[0].mxu1  ;;  %v689_v56 = vpop.f32.mrb[1].mxu0 }
  0xf8   :  { %v711_v57 = vpop.f32.mrb[1].mxu1  ;;  %v690_v58 = vadd.f32 %v689_v56, %v688_v53  ;;  %v691_v60 = vpop.f32.mrb[2].mxu0 }
  0xf9   :  { %v712_v59 = vadd.f32 %v711_v57, %v710_v54  ;;  %v713_v61 = vpop.f32.mrb[2].mxu1  ;;  %v692_v62 = vpop.f32.mrb[3].mxu0 }
  0xfa   :  { %v714_v63 = vpop.f32.mrb[3].mxu1  ;;  %v341_v0 = vadd.f32 %v690_v58, %v617_v55 }
  0xfc   :  { %v381_v1 = vadd.f32 %v712_v59, %v341_v0 }
  0xfe   :  { %v386_v2 = vmax.f32 %v381_v1, 0.0 }
 0x100   :  { %v387_v3 = vpack.c.bf16 %v386_v2, %v386_v2 }
 0x102   :  { %751 = vmatmul.mubr.bf16.vlgmr.msra.gmra.mrb[4].mxu0 %v387_v3 }
 0x1d5   :  { %v493_v7 = vpop.f32.mrb[4].mxu0 }
 0x1d6   :  { %v494_v8 = vadd.f32 %v654_v6, %v493_v7  ;;  %v752_v9 = vpop.f32.mrb[5].mxu0 }
 0x1d7   :  { %v496_v10 = vpop.f32.mrb[6].mxu0 }
 0x1d8   :  { %v499_v11 = vmax.f32 %v494_v8, 0.0  ;;  %v753_v12 = vpop.f32.mrb[7].mxu0 }
 0x1da   :  { %v500_v13 = vpack.c.bf16 %v499_v11, %v499_v11 }
 0x1dc   :  { %771 = vmatmul.mubr.bf16.vlgmr.msra.gmra.mrb[4].mxu1 %v500_v13 }
 0x2af   :  { %v606_v15 = vpop.f32.mrb[4].mxu1 }
 0x2b0   :  { %v607_v16 = vadd.f32 %v663_v14, %v606_v15  ;;  %v772_v17 = vpop.f32.mrb[5].mxu1 }
 0x2b1   :  { %v609_v18 = vpop.f32.mrb[6].mxu1 }
 0x2b2   :  { %612 = vst [vmem:[%s1057_s7] sm:$0xff] %v607_v16  ;;  %v773_v19 = vpop.f32.mrb[7].mxu1 }

</bundles_post_ra>
